<compile_context>
chip_gen: v7x
topology: tpu7x:2x2x1
jax: 0.10.0
libtpu: 0.0.40
codegen_flags: <defaults>
</compile_context>

<pallas_src>
import jax
import jax.numpy as jnp
from jax import lax
from jax.experimental import pallas as pl
from jax.experimental.pallas import tpu as pltpu


def _round_up(x, m):
    return ((x + m - 1) // m) * m


def _largest_divisor_leq(n, cap):
    cap = max(1, min(cap, n))
    for d in range(cap, 0, -1):
        if n % d == 0:
            return d
    return 1


def _bayes_lstm_kernel(x_ref, h0_ref, c0_ref, w_ref, b_ref,
                       out_ref, hT_ref, cT_ref,
                       h_scr, c_scr):
    t_blk = pl.program_id(1)

    # Load the initial hidden / cell state at the first time-block of each
    # batch tile (the time axis is the innermost, sequential grid axis).
    @pl.when(t_blk == 0)
    def _():
        h_scr[...] = h0_ref[...]
        c_scr[...] = c0_ref[...]

    w = w_ref[...]        # (I_pad + H_pad, 4*H_pad) -- loaded once per grid step
    bias = b_ref[...]     # (B_tile, 4*H_pad)        -- pre-broadcast wrapper-side
    tt = out_ref.shape[0]
    hdim = h_scr.shape[-1]

    def step(t, carry):
        x = x_ref[t]                          # (B_tile, I_pad)
        h = h_scr[...]                        # (B_tile, H_pad)
        xh = jnp.concatenate([x, h], axis=-1)  # (B_tile, I_pad + H_pad)
        # Single fused MXU matmul for all 4 gates, f32 accumulation.
        pre = jnp.dot(xh, w, preferred_element_type=jnp.float32) + bias
        ingate = jax.nn.sigmoid(pre[:, 0 * hdim:1 * hdim])
        forgetgate = jax.nn.sigmoid(pre[:, 1 * hdim:2 * hdim])
        cellgate = jnp.tanh(pre[:, 2 * hdim:3 * hdim])
        outgate = jax.nn.sigmoid(pre[:, 3 * hdim:4 * hdim])

        cy = forgetgate * c_scr[...] + ingate * cellgate
        hy = outgate * jnp.tanh(cy)

        h_scr[...] = hy
        c_scr[...] = cy
        out_ref[t] = hy                       # lane-dense (B_tile, H_pad) store
        return carry

    lax.fori_loop(0, tt, step, 0, unroll=True)

    @pl.when(t_blk == pl.num_programs(1) - 1)
    def _():
        hT_ref[...] = h_scr[...]
        cT_ref[...] = c_scr[...]


def bayes_lstm_forward(emb, hx, cx, wx, wh, b, *, block_t=8):
    """emb: (T, B, I); hx, cx: (1, B, H); wx: (4, I, H); wh: (4, H, H); b: (4, 1, H).

    Returns (outputs, (hx_T, cx_T)) with outputs (T, 1, B, H) and hx_T/cx_T
    (1, B, H), matching the PyTorch BayesLSTM.forward (eval mode)."""
    T, B, I = emb.shape
    H = wh.shape[-1]
    f32 = jnp.float32

    # Pad to hardware-friendly tiles: B -> sublane multiple, I/H -> lane multiple.
    B_pad = _round_up(B, 8)
    H_pad = _round_up(H, 128)
    I_pad = _round_up(I, 128)
    batch_block = 8                       # one sublane group per batch tile
    tt = _largest_divisor_leq(T, block_t)  # timesteps per grid step

    emb_p = jnp.pad(emb.astype(f32), ((0, 0), (0, B_pad - B), (0, I_pad - I)))
    h0_p = jnp.pad(hx[0].astype(f32), ((0, B_pad - B), (0, H_pad - H)))
    c0_p = jnp.pad(cx[0].astype(f32), ((0, B_pad - B), (0, H_pad - H)))

    # Fused gate weights: rows [0:I] multiply x, rows [I_pad:I_pad+H] multiply h;
    # gate g occupies columns [g*H_pad : g*H_pad + H].  Zero padding keeps the
    # padded hidden lanes inert (pre-activation 0 -> cellgate 0 -> cy/hy stay 0).
    w_fused = jnp.zeros((I_pad + H_pad, 4 * H_pad), f32)
    b_fused = jnp.zeros((1, 4 * H_pad), f32)
    for g in range(4):
        c0, c1 = g * H_pad, g * H_pad + H
        w_fused = w_fused.at[:I, c0:c1].set(wx[g].astype(f32))
        w_fused = w_fused.at[I_pad:I_pad + H, c0:c1].set(wh[g].astype(f32))
        b_fused = b_fused.at[:, c0:c1].set(b[g].astype(f32))
    b_fused = jnp.tile(b_fused, (batch_block, 1))   # hoisted bias broadcast

    nb = B_pad // batch_block
    nt = T // tt

    grid_spec = pltpu.PrefetchScalarGridSpec(
        num_scalar_prefetch=0,
        grid=(nb, nt),   # (parallel batch tiles, sequential time blocks)
        in_specs=[
            pl.BlockSpec((tt, batch_block, I_pad), lambda bi, ti: (ti, bi, 0)),  # emb block
            pl.BlockSpec((batch_block, H_pad), lambda bi, ti: (bi, 0)),          # h0 tile
            pl.BlockSpec((batch_block, H_pad), lambda bi, ti: (bi, 0)),          # c0 tile
            pl.BlockSpec((I_pad + H_pad, 4 * H_pad), lambda bi, ti: (0, 0)),     # fused W
            pl.BlockSpec((batch_block, 4 * H_pad), lambda bi, ti: (0, 0)),       # fused bias
        ],
        out_specs=[
            pl.BlockSpec((tt, batch_block, H_pad), lambda bi, ti: (ti, bi, 0)),  # outputs
            pl.BlockSpec((batch_block, H_pad), lambda bi, ti: (bi, 0)),          # final h
            pl.BlockSpec((batch_block, H_pad), lambda bi, ti: (bi, 0)),          # final c
        ],
        scratch_shapes=[
            pltpu.VMEM((batch_block, H_pad), jnp.float32),   # carried h
            pltpu.VMEM((batch_block, H_pad), jnp.float32),   # carried c
        ],
    )

    out_p, hT_p, cT_p = pl.pallas_call(
        _bayes_lstm_kernel,
        out_shape=(
            jax.ShapeDtypeStruct((T, B_pad, H_pad), jnp.float32),
            jax.ShapeDtypeStruct((B_pad, H_pad), jnp.float32),
            jax.ShapeDtypeStruct((B_pad, H_pad), jnp.float32),
        ),
        grid_spec=grid_spec,
        compiler_params=pltpu.CompilerParams(
            dimension_semantics=("parallel", "arbitrary"),
            vmem_limit_bytes=32 * 1024 * 1024,
        ),
    )(emb_p, h0_p, c0_p, w_fused, b_fused)

    # Back to the PyTorch module's shapes / broadcasting convention.
    outputs = out_p[:, :B, :H].reshape(T, 1, B, H)
    hT = hT_p[:B, :H][None]
    cT = cT_p[:B, :H][None]
    return outputs, (hT, cT)


def _reference_forward(emb, hx, cx, wx, wh, b):
    """Pure-JAX reference mirroring the PyTorch loop (eval mode)."""
    T = emb.shape[0]
    h = hx          # (1, B, H)
    c = cx          # (1, B, H)
    outs = []
    for t in range(T):
        x = emb[t]                                   # (B, I)
        xh_h = h[0]                                  # (B, H)

        def gate(g, act):
            pre = x @ wx[g] + xh_h @ wh[g] + b[g]
            return act(pre)

        ingate = gate(0, jax.nn.sigmoid)
        forgetgate = gate(1, jax.nn.sigmoid)
        cellgate = gate(2, jnp.tanh)
        outgate = gate(3, jax.nn.sigmoid)
        c = forgetgate * c + ingate * cellgate       # (1, B, H) via broadcast
        h = outgate * jnp.tanh(c)
        outs.append(h)
    return jnp.stack(outs, 0), (h, c)


if __name__ == "__main__":
    T, B, I, H = 8, 2, 16, 32

    key = jax.random.PRNGKey(0)
    k_emb, k_h, k_c, k_wx, k_wh, k_b = jax.random.split(key, 6)

    # Deterministic parameter init mimicking nn.Linear's U(-1/sqrt(fan_in), 1/sqrt(fan_in)).
    fan_in = I + H
    bound = 1.0 / jnp.sqrt(jnp.float32(fan_in))
    wx = jax.random.uniform(k_wx, (4, I, H), jnp.float32, -bound, bound)
    wh = jax.random.uniform(k_wh, (4, H, H), jnp.float32, -bound, bound)
    b = jax.random.uniform(k_b, (4, 1, H), jnp.float32, -bound, bound)
    # theta_lgstd exists in the module but is unused in the eval-mode forward.

    emb = jax.random.normal(k_emb, (T, B, I), jnp.float32)
    hx0 = jax.random.normal(k_h, (1, B, H), jnp.float32)
    cx0 = jax.random.normal(k_c, (1, B, H), jnp.float32)

    outputs, (hT, cT) = bayes_lstm_forward(emb, hx0, cx0, wx, wh, b)
    jax.block_until_ready((outputs, hT, cT))

    ref_out, (ref_h, ref_c) = _reference_forward(emb, hx0, cx0, wx, wh, b)
    assert outputs.shape == (T, 1, B, H)
    assert hT.shape == (1, B, H) and cT.shape == (1, B, H)
    assert jnp.allclose(outputs, ref_out, atol=1e-4, rtol=1e-4)
    assert jnp.allclose(hT, ref_h, atol=1e-4, rtol=1e-4)
    assert jnp.allclose(cT, ref_c, atol=1e-4, rtol=1e-4)

    print("KERNEL_OK")
</pallas_src>

<mosaic_0001>
module attributes {stable_mosaic.version = 11 : i64} {
  func.func @_bayes_lstm_kernel(%arg0: i32, %arg1: i32, %arg2: memref<8x8x128xf32, #tpu.memory_space<vmem>>, %arg3: memref<8x128xf32, #tpu.memory_space<vmem>>, %arg4: memref<8x128xf32, #tpu.memory_space<vmem>>, %arg5: memref<256x512xf32, #tpu.memory_space<vmem>>, %arg6: memref<8x512xf32, #tpu.memory_space<vmem>>, %arg7: memref<8x8x128xf32, #tpu.memory_space<vmem>>, %arg8: memref<8x128xf32, #tpu.memory_space<vmem>>, %arg9: memref<8x128xf32, #tpu.memory_space<vmem>>, %arg10: memref<8x128xf32, #tpu.memory_space<vmem>>, %arg11: memref<8x128xf32, #tpu.memory_space<vmem>>) attributes {dimension_semantics = [#tpu.dimension_semantics<parallel>, #tpu.dimension_semantics<arbitrary>], iteration_bounds = array<i64: 1, 1>, scalar_prefetch = 0 : i64, scratch_operands = 2 : i64, tpu.core_type = #tpu.core_type<tc>, window_params = [{transform_indices = @transform_0, window_bounds = array<i64: 8, 8, 128>}, {transform_indices = @transform_1, window_bounds = array<i64: 8, 128>}, {transform_indices = @transform_2, window_bounds = array<i64: 8, 128>}, {pipeline_mode = #tpu.pipeline_mode<synchronous>, transform_indices = @transform_3, window_bounds = array<i64: 256, 512>}, {pipeline_mode = #tpu.pipeline_mode<synchronous>, transform_indices = @transform_4, window_bounds = array<i64: 8, 512>}, {transform_indices = @transform_5, window_bounds = array<i64: 8, 8, 128>}, {transform_indices = @transform_6, window_bounds = array<i64: 8, 128>}, {transform_indices = @transform_7, window_bounds = array<i64: 8, 128>}]} {
    %c0_i32 = arith.constant 0 : i32
    %0 = arith.cmpi eq, %arg1, %c0_i32 : i32
    %1 = arith.extui %0 : i1 to i32
    %c0_i32_0 = arith.constant 0 : i32
    %2 = arith.cmpi ne, %1, %c0_i32_0 : i32
    scf.if %2 {
      %c0_134 = arith.constant 0 : index
      %c0_135 = arith.constant 0 : index
      %320 = vector.load %arg3[%c0_134, %c0_135] : memref<8x128xf32, #tpu.memory_space<vmem>>, vector<8x128xf32>
      %c0_136 = arith.constant 0 : index
      %c0_137 = arith.constant 0 : index
      %321 = vector.load %arg10[%c0_136, %c0_137] : memref<8x128xf32, #tpu.memory_space<vmem>>, vector<8x128xf32>
      tpu.vector_store %arg10[%c0_136, %c0_137], %320 {strides = array<i32>} : memref<8x128xf32, #tpu.memory_space<vmem>>, vector<8x128xf32>,
      %c0_138 = arith.constant 0 : index
      %c0_139 = arith.constant 0 : index
      %322 = vector.load %arg4[%c0_138, %c0_139] : memref<8x128xf32, #tpu.memory_space<vmem>>, vector<8x128xf32>
      %c0_140 = arith.constant 0 : index
      %c0_141 = arith.constant 0 : index
      %323 = vector.load %arg11[%c0_140, %c0_141] : memref<8x128xf32, #tpu.memory_space<vmem>>, vector<8x128xf32>
      tpu.vector_store %arg11[%c0_140, %c0_141], %322 {strides = array<i32>} : memref<8x128xf32, #tpu.memory_space<vmem>>, vector<8x128xf32>,
    } else {
    }
    %c0 = arith.constant 0 : index
    %c0_1 = arith.constant 0 : index
    %3 = vector.load %arg5[%c0, %c0_1] : memref<256x512xf32, #tpu.memory_space<vmem>>, vector<256x512xf32>
    %c0_2 = arith.constant 0 : index
    %c0_3 = arith.constant 0 : index
    %4 = vector.load %arg6[%c0_2, %c0_3] : memref<8x512xf32, #tpu.memory_space<vmem>>, vector<8x512xf32>
    %c0_i32_4 = arith.constant 0 : i32
    %5 = arith.index_cast %c0_i32_4 : i32 to index
    %c0_5 = arith.constant 0 : index
    %c0_6 = arith.constant 0 : index
    %6 = vector.load %arg2[%5, %c0_5, %c0_6] : memref<8x8x128xf32, #tpu.memory_space<vmem>>, vector<1x8x128xf32>
    %7 = vector.shape_cast %6 : vector<1x8x128xf32> to vector<8x128xf32>
    %c0_7 = arith.constant 0 : index
    %c0_8 = arith.constant 0 : index
    %8 = vector.load %arg10[%c0_7, %c0_8] : memref<8x128xf32, #tpu.memory_space<vmem>>, vector<8x128xf32>
    %9 = tpu.concatenate %7, %8 in 1 : vector<8x128xf32>, vector<8x128xf32> -> vector<8x256xf32>
    %cst = arith.constant dense<0.000000e+00> : vector<8x512xf32>
    %10 = tpu.matmul %9, %3, %cst {dimension_numbers = #tpu.dot_dimension_numbers<[1], [0], [0], [1], [0, 0, 1, 1], [], []>} : vector<8x256xf32>, vector<256x512xf32>, vector<8x512xf32> -> vector<8x512xf32>
    %11 = arith.addf %10, %4 : vector<8x512xf32>
    %12 = vector.extract_strided_slice %11 {offsets = [0, 0], sizes = [8, 128], strides = [1, 1]} : vector<8x512xf32> to vector<8x128xf32>
    %13 = arith.negf %12 : vector<8x128xf32>
    %14 = math.exp %13 : vector<8x128xf32>
    %cst_9 = arith.constant 1.000000e+00 : f32
    %15 = vector.broadcast %cst_9 : f32 to vector<8x128xf32>
    %16 = arith.addf %15, %14 : vector<8x128xf32>
    %17 = arith.divf %15, %16 : vector<8x128xf32>
    %18 = vector.extract_strided_slice %11 {offsets = [0, 128], sizes = [8, 128], strides = [1, 1]} : vector<8x512xf32> to vector<8x128xf32>
    %19 = arith.negf %18 : vector<8x128xf32>
    %20 = math.exp %19 : vector<8x128xf32>
    %cst_10 = arith.constant 1.000000e+00 : f32
    %21 = vector.broadcast %cst_10 : f32 to vector<8x128xf32>
    %22 = arith.addf %21, %20 : vector<8x128xf32>
    %23 = arith.divf %21, %22 : vector<8x128xf32>
    %24 = vector.extract_strided_slice %11 {offsets = [0, 256], sizes = [8, 128], strides = [1, 1]} : vector<8x512xf32> to vector<8x128xf32>
    %25 = math.tanh %24 : vector<8x128xf32>
    %26 = vector.extract_strided_slice %11 {offsets = [0, 384], sizes = [8, 128], strides = [1, 1]} : vector<8x512xf32> to vector<8x128xf32>
    %27 = arith.negf %26 : vector<8x128xf32>
    %28 = math.exp %27 : vector<8x128xf32>
    %cst_11 = arith.constant 1.000000e+00 : f32
    %29 = vector.broadcast %cst_11 : f32 to vector<8x128xf32>
    %30 = arith.addf %29, %28 : vector<8x128xf32>
    %31 = arith.divf %29, %30 : vector<8x128xf32>
    %c0_12 = arith.constant 0 : index
    %c0_13 = arith.constant 0 : index
    %32 = vector.load %arg11[%c0_12, %c0_13] : memref<8x128xf32, #tpu.memory_space<vmem>>, vector<8x128xf32>
    %33 = arith.mulf %23, %32 : vector<8x128xf32>
    %34 = arith.mulf %17, %25 : vector<8x128xf32>
    %35 = arith.addf %33, %34 : vector<8x128xf32>
    %36 = math.tanh %35 : vector<8x128xf32>
    %37 = arith.mulf %31, %36 : vector<8x128xf32>
    %c0_14 = arith.constant 0 : index
    %c0_15 = arith.constant 0 : index
    %38 = vector.load %arg10[%c0_14, %c0_15] : memref<8x128xf32, #tpu.memory_space<vmem>>, vector<8x128xf32>
    tpu.vector_store %arg10[%c0_14, %c0_15], %37 {strides = array<i32>} : memref<8x128xf32, #tpu.memory_space<vmem>>, vector<8x128xf32>,
    %c0_16 = arith.constant 0 : index
    %c0_17 = arith.constant 0 : index
    %39 = vector.load %arg11[%c0_16, %c0_17] : memref<8x128xf32, #tpu.memory_space<vmem>>, vector<8x128xf32>
    tpu.vector_store %arg11[%c0_16, %c0_17], %35 {strides = array<i32>} : memref<8x128xf32, #tpu.memory_space<vmem>>, vector<8x128xf32>,
    %40 = arith.index_cast %c0_i32_4 : i32 to index
    %c0_18 = arith.constant 0 : index
    %c0_19 = arith.constant 0 : index
    %41 = vector.load %arg7[%40, %c0_18, %c0_19] : memref<8x8x128xf32, #tpu.memory_space<vmem>>, vector<1x8x128xf32>
    %42 = vector.shape_cast %41 : vector<1x8x128xf32> to vector<8x128xf32>
    %43 = vector.shape_cast %37 : vector<8x128xf32> to vector<1x8x128xf32>
    tpu.vector_store %arg7[%40, %c0_18, %c0_19], %43 {strides = array<i32>} : memref<8x8x128xf32, #tpu.memory_space<vmem>>, vector<1x8x128xf32>,
    %c1_i32 = arith.constant 1 : i32
    %44 = arith.index_cast %c1_i32 : i32 to index
    %c0_20 = arith.constant 0 : index
    %c0_21 = arith.constant 0 : index
    %45 = vector.load %arg2[%44, %c0_20, %c0_21] : memref<8x8x128xf32, #tpu.memory_space<vmem>>, vector<1x8x128xf32>
    %46 = vector.shape_cast %45 : vector<1x8x128xf32> to vector<8x128xf32>
    %c0_22 = arith.constant 0 : index
    %c0_23 = arith.constant 0 : index
    %47 = vector.load %arg10[%c0_22, %c0_23] : memref<8x128xf32, #tpu.memory_space<vmem>>, vector<8x128xf32>
    %48 = tpu.concatenate %46, %47 in 1 : vector<8x128xf32>, vector<8x128xf32> -> vector<8x256xf32>
    %cst_24 = arith.constant dense<0.000000e+00> : vector<8x512xf32>
    %49 = tpu.matmul %48, %3, %cst_24 {dimension_numbers = #tpu.dot_dimension_numbers<[1], [0], [0], [1], [0, 0, 1, 1], [], []>} : vector<8x256xf32>, vector<256x512xf32>, vector<8x512xf32> -> vector<8x512xf32>
    %50 = arith.addf %49, %4 : vector<8x512xf32>
    %51 = vector.extract_strided_slice %50 {offsets = [0, 0], sizes = [8, 128], strides = [1, 1]} : vector<8x512xf32> to vector<8x128xf32>
    %52 = arith.negf %51 : vector<8x128xf32>
    %53 = math.exp %52 : vector<8x128xf32>
    %cst_25 = arith.constant 1.000000e+00 : f32
    %54 = vector.broadcast %cst_25 : f32 to vector<8x128xf32>
    %55 = arith.addf %54, %53 : vector<8x128xf32>
    %56 = arith.divf %54, %55 : vector<8x128xf32>
    %57 = vector.extract_strided_slice %50 {offsets = [0, 128], sizes = [8, 128], strides = [1, 1]} : vector<8x512xf32> to vector<8x128xf32>
    %58 = arith.negf %57 : vector<8x128xf32>
    %59 = math.exp %58 : vector<8x128xf32>
    %cst_26 = arith.constant 1.000000e+00 : f32
    %60 = vector.broadcast %cst_26 : f32 to vector<8x128xf32>
    %61 = arith.addf %60, %59 : vector<8x128xf32>
    %62 = arith.divf %60, %61 : vector<8x128xf32>
    %63 = vector.extract_strided_slice %50 {offsets = [0, 256], sizes = [8, 128], strides = [1, 1]} : vector<8x512xf32> to vector<8x128xf32>
    %64 = math.tanh %63 : vector<8x128xf32>
    %65 = vector.extract_strided_slice %50 {offsets = [0, 384], sizes = [8, 128], strides = [1, 1]} : vector<8x512xf32> to vector<8x128xf32>
    %66 = arith.negf %65 : vector<8x128xf32>
    %67 = math.exp %66 : vector<8x128xf32>
    %cst_27 = arith.constant 1.000000e+00 : f32
    %68 = vector.broadcast %cst_27 : f32 to vector<8x128xf32>
    %69 = arith.addf %68, %67 : vector<8x128xf32>
    %70 = arith.divf %68, %69 : vector<8x128xf32>
    %c0_28 = arith.constant 0 : index
    %c0_29 = arith.constant 0 : index
    %71 = vector.load %arg11[%c0_28, %c0_29] : memref<8x128xf32, #tpu.memory_space<vmem>>, vector<8x128xf32>
    %72 = arith.mulf %62, %71 : vector<8x128xf32>
    %73 = arith.mulf %56, %64 : vector<8x128xf32>
    %74 = arith.addf %72, %73 : vector<8x128xf32>
    %75 = math.tanh %74 : vector<8x128xf32>
    %76 = arith.mulf %70, %75 : vector<8x128xf32>
    %c0_30 = arith.constant 0 : index
    %c0_31 = arith.constant 0 : index
    %77 = vector.load %arg10[%c0_30, %c0_31] : memref<8x128xf32, #tpu.memory_space<vmem>>, vector<8x128xf32>
    tpu.vector_store %arg10[%c0_30, %c0_31], %76 {strides = array<i32>} : memref<8x128xf32, #tpu.memory_space<vmem>>, vector<8x128xf32>,
    %c0_32 = arith.constant 0 : index
    %c0_33 = arith.constant 0 : index
    %78 = vector.load %arg11[%c0_32, %c0_33] : memref<8x128xf32, #tpu.memory_space<vmem>>, vector<8x128xf32>
    tpu.vector_store %arg11[%c0_32, %c0_33], %74 {strides = array<i32>} : memref<8x128xf32, #tpu.memory_space<vmem>>, vector<8x128xf32>,
    %79 = arith.index_cast %c1_i32 : i32 to index
    %c0_34 = arith.constant 0 : index
    %c0_35 = arith.constant 0 : index
    %80 = vector.load %arg7[%79, %c0_34, %c0_35] : memref<8x8x128xf32, #tpu.memory_space<vmem>>, vector<1x8x128xf32>
    %81 = vector.shape_cast %80 : vector<1x8x128xf32> to vector<8x128xf32>
    %82 = vector.shape_cast %76 : vector<8x128xf32> to vector<1x8x128xf32>
    tpu.vector_store %arg7[%79, %c0_34, %c0_35], %82 {strides = array<i32>} : memref<8x8x128xf32, #tpu.memory_space<vmem>>, vector<1x8x128xf32>,
    %c2_i32 = arith.constant 2 : i32
    %83 = arith.index_cast %c2_i32 : i32 to index
    %c0_36 = arith.constant 0 : index
    %c0_37 = arith.constant 0 : index
    %84 = vector.load %arg2[%83, %c0_36, %c0_37] : memref<8x8x128xf32, #tpu.memory_space<vmem>>, vector<1x8x128xf32>
    %85 = vector.shape_cast %84 : vector<1x8x128xf32> to vector<8x128xf32>
    %c0_38 = arith.constant 0 : index
    %c0_39 = arith.constant 0 : index
    %86 = vector.load %arg10[%c0_38, %c0_39] : memref<8x128xf32, #tpu.memory_space<vmem>>, vector<8x128xf32>
    %87 = tpu.concatenate %85, %86 in 1 : vector<8x128xf32>, vector<8x128xf32> -> vector<8x256xf32>
    %cst_40 = arith.constant dense<0.000000e+00> : vector<8x512xf32>
    %88 = tpu.matmul %87, %3, %cst_40 {dimension_numbers = #tpu.dot_dimension_numbers<[1], [0], [0], [1], [0, 0, 1, 1], [], []>} : vector<8x256xf32>, vector<256x512xf32>, vector<8x512xf32> -> vector<8x512xf32>
    %89 = arith.addf %88, %4 : vector<8x512xf32>
    %90 = vector.extract_strided_slice %89 {offsets = [0, 0], sizes = [8, 128], strides = [1, 1]} : vector<8x512xf32> to vector<8x128xf32>
    %91 = arith.negf %90 : vector<8x128xf32>
    %92 = math.exp %91 : vector<8x128xf32>
    %cst_41 = arith.constant 1.000000e+00 : f32
    %93 = vector.broadcast %cst_41 : f32 to vector<8x128xf32>
    %94 = arith.addf %93, %92 : vector<8x128xf32>
    %95 = arith.divf %93, %94 : vector<8x128xf32>
    %96 = vector.extract_strided_slice %89 {offsets = [0, 128], sizes = [8, 128], strides = [1, 1]} : vector<8x512xf32> to vector<8x128xf32>
    %97 = arith.negf %96 : vector<8x128xf32>
    %98 = math.exp %97 : vector<8x128xf32>
    %cst_42 = arith.constant 1.000000e+00 : f32
    %99 = vector.broadcast %cst_42 : f32 to vector<8x128xf32>
    %100 = arith.addf %99, %98 : vector<8x128xf32>
    %101 = arith.divf %99, %100 : vector<8x128xf32>
    %102 = vector.extract_strided_slice %89 {offsets = [0, 256], sizes = [8, 128], strides = [1, 1]} : vector<8x512xf32> to vector<8x128xf32>
    %103 = math.tanh %102 : vector<8x128xf32>
    %104 = vector.extract_strided_slice %89 {offsets = [0, 384], sizes = [8, 128], strides = [1, 1]} : vector<8x512xf32> to vector<8x128xf32>
    %105 = arith.negf %104 : vector<8x128xf32>
    %106 = math.exp %105 : vector<8x128xf32>
    %cst_43 = arith.constant 1.000000e+00 : f32
    %107 = vector.broadcast %cst_43 : f32 to vector<8x128xf32>
    %108 = arith.addf %107, %106 : vector<8x128xf32>
    %109 = arith.divf %107, %108 : vector<8x128xf32>
    %c0_44 = arith.constant 0 : index
    %c0_45 = arith.constant 0 : index
    %110 = vector.load %arg11[%c0_44, %c0_45] : memref<8x128xf32, #tpu.memory_space<vmem>>, vector<8x128xf32>
    %111 = arith.mulf %101, %110 : vector<8x128xf32>
    %112 = arith.mulf %95, %103 : vector<8x128xf32>
    %113 = arith.addf %111, %112 : vector<8x128xf32>
    %114 = math.tanh %113 : vector<8x128xf32>
    %115 = arith.mulf %109, %114 : vector<8x128xf32>
    %c0_46 = arith.constant 0 : index
    %c0_47 = arith.constant 0 : index
    %116 = vector.load %arg10[%c0_46, %c0_47] : memref<8x128xf32, #tpu.memory_space<vmem>>, vector<8x128xf32>
    tpu.vector_store %arg10[%c0_46, %c0_47], %115 {strides = array<i32>} : memref<8x128xf32, #tpu.memory_space<vmem>>, vector<8x128xf32>,
    %c0_48 = arith.constant 0 : index
    %c0_49 = arith.constant 0 : index
    %117 = vector.load %arg11[%c0_48, %c0_49] : memref<8x128xf32, #tpu.memory_space<vmem>>, vector<8x128xf32>
    tpu.vector_store %arg11[%c0_48, %c0_49], %113 {strides = array<i32>} : memref<8x128xf32, #tpu.memory_space<vmem>>, vector<8x128xf32>,
    %118 = arith.index_cast %c2_i32 : i32 to index
    %c0_50 = arith.constant 0 : index
    %c0_51 = arith.constant 0 : index
    %119 = vector.load %arg7[%118, %c0_50, %c0_51] : memref<8x8x128xf32, #tpu.memory_space<vmem>>, vector<1x8x128xf32>
    %120 = vector.shape_cast %119 : vector<1x8x128xf32> to vector<8x128xf32>
    %121 = vector.shape_cast %115 : vector<8x128xf32> to vector<1x8x128xf32>
    tpu.vector_store %arg7[%118, %c0_50, %c0_51], %121 {strides = array<i32>} : memref<8x8x128xf32, #tpu.memory_space<vmem>>, vector<1x8x128xf32>,
    %c3_i32 = arith.constant 3 : i32
    %122 = arith.index_cast %c3_i32 : i32 to index
    %c0_52 = arith.constant 0 : index
    %c0_53 = arith.constant 0 : index
    %123 = vector.load %arg2[%122, %c0_52, %c0_53] : memref<8x8x128xf32, #tpu.memory_space<vmem>>, vector<1x8x128xf32>
    %124 = vector.shape_cast %123 : vector<1x8x128xf32> to vector<8x128xf32>
    %c0_54 = arith.constant 0 : index
    %c0_55 = arith.constant 0 : index
    %125 = vector.load %arg10[%c0_54, %c0_55] : memref<8x128xf32, #tpu.memory_space<vmem>>, vector<8x128xf32>
    %126 = tpu.concatenate %124, %125 in 1 : vector<8x128xf32>, vector<8x128xf32> -> vector<8x256xf32>
    %cst_56 = arith.constant dense<0.000000e+00> : vector<8x512xf32>
    %127 = tpu.matmul %126, %3, %cst_56 {dimension_numbers = #tpu.dot_dimension_numbers<[1], [0], [0], [1], [0, 0, 1, 1], [], []>} : vector<8x256xf32>, vector<256x512xf32>, vector<8x512xf32> -> vector<8x512xf32>
    %128 = arith.addf %127, %4 : vector<8x512xf32>
    %129 = vector.extract_strided_slice %128 {offsets = [0, 0], sizes = [8, 128], strides = [1, 1]} : vector<8x512xf32> to vector<8x128xf32>
    %130 = arith.negf %129 : vector<8x128xf32>
    %131 = math.exp %130 : vector<8x128xf32>
    %cst_57 = arith.constant 1.000000e+00 : f32
    %132 = vector.broadcast %cst_57 : f32 to vector<8x128xf32>
    %133 = arith.addf %132, %131 : vector<8x128xf32>
    %134 = arith.divf %132, %133 : vector<8x128xf32>
    %135 = vector.extract_strided_slice %128 {offsets = [0, 128], sizes = [8, 128], strides = [1, 1]} : vector<8x512xf32> to vector<8x128xf32>
    %136 = arith.negf %135 : vector<8x128xf32>
    %137 = math.exp %136 : vector<8x128xf32>
    %cst_58 = arith.constant 1.000000e+00 : f32
    %138 = vector.broadcast %cst_58 : f32 to vector<8x128xf32>
    %139 = arith.addf %138, %137 : vector<8x128xf32>
    %140 = arith.divf %138, %139 : vector<8x128xf32>
    %141 = vector.extract_strided_slice %128 {offsets = [0, 256], sizes = [8, 128], strides = [1, 1]} : vector<8x512xf32> to vector<8x128xf32>
    %142 = math.tanh %141 : vector<8x128xf32>
    %143 = vector.extract_strided_slice %128 {offsets = [0, 384], sizes = [8, 128], strides = [1, 1]} : vector<8x512xf32> to vector<8x128xf32>
    %144 = arith.negf %143 : vector<8x128xf32>
    %145 = math.exp %144 : vector<8x128xf32>
    %cst_59 = arith.constant 1.000000e+00 : f32
    %146 = vector.broadcast %cst_59 : f32 to vector<8x128xf32>
    %147 = arith.addf %146, %145 : vector<8x128xf32>
    %148 = arith.divf %146, %147 : vector<8x128xf32>
    %c0_60 = arith.constant 0 : index
    %c0_61 = arith.constant 0 : index
    %149 = vector.load %arg11[%c0_60, %c0_61] : memref<8x128xf32, #tpu.memory_space<vmem>>, vector<8x128xf32>
    %150 = arith.mulf %140, %149 : vector<8x128xf32>
    %151 = arith.mulf %134, %142 : vector<8x128xf32>
    %152 = arith.addf %150, %151 : vector<8x128xf32>
    %153 = math.tanh %152 : vector<8x128xf32>
    %154 = arith.mulf %148, %153 : vector<8x128xf32>
    %c0_62 = arith.constant 0 : index
    %c0_63 = arith.constant 0 : index
    %155 = vector.load %arg10[%c0_62, %c0_63] : memref<8x128xf32, #tpu.memory_space<vmem>>, vector<8x128xf32>
    tpu.vector_store %arg10[%c0_62, %c0_63], %154 {strides = array<i32>} : memref<8x128xf32, #tpu.memory_space<vmem>>, vector<8x128xf32>,
    %c0_64 = arith.constant 0 : index
    %c0_65 = arith.constant 0 : index
    %156 = vector.load %arg11[%c0_64, %c0_65] : memref<8x128xf32, #tpu.memory_space<vmem>>, vector<8x128xf32>
    tpu.vector_store %arg11[%c0_64, %c0_65], %152 {strides = array<i32>} : memref<8x128xf32, #tpu.memory_space<vmem>>, vector<8x128xf32>,
    %157 = arith.index_cast %c3_i32 : i32 to index
    %c0_66 = arith.constant 0 : index
    %c0_67 = arith.constant 0 : index
    %158 = vector.load %arg7[%157, %c0_66, %c0_67] : memref<8x8x128xf32, #tpu.memory_space<vmem>>, vector<1x8x128xf32>
    %159 = vector.shape_cast %158 : vector<1x8x128xf32> to vector<8x128xf32>
    %160 = vector.shape_cast %154 : vector<8x128xf32> to vector<1x8x128xf32>
    tpu.vector_store %arg7[%157, %c0_66, %c0_67], %160 {strides = array<i32>} : memref<8x8x128xf32, #tpu.memory_space<vmem>>, vector<1x8x128xf32>,
    %c4_i32 = arith.constant 4 : i32
    %161 = arith.index_cast %c4_i32 : i32 to index
    %c0_68 = arith.constant 0 : index
    %c0_69 = arith.constant 0 : index
    %162 = vector.load %arg2[%161, %c0_68, %c0_69] : memref<8x8x128xf32, #tpu.memory_space<vmem>>, vector<1x8x128xf32>
    %163 = vector.shape_cast %162 : vector<1x8x128xf32> to vector<8x128xf32>
    %c0_70 = arith.constant 0 : index
    %c0_71 = arith.constant 0 : index
    %164 = vector.load %arg10[%c0_70, %c0_71] : memref<8x128xf32, #tpu.memory_space<vmem>>, vector<8x128xf32>
    %165 = tpu.concatenate %163, %164 in 1 : vector<8x128xf32>, vector<8x128xf32> -> vector<8x256xf32>
    %cst_72 = arith.constant dense<0.000000e+00> : vector<8x512xf32>
    %166 = tpu.matmul %165, %3, %cst_72 {dimension_numbers = #tpu.dot_dimension_numbers<[1], [0], [0], [1], [0, 0, 1, 1], [], []>} : vector<8x256xf32>, vector<256x512xf32>, vector<8x512xf32> -> vector<8x512xf32>
    %167 = arith.addf %166, %4 : vector<8x512xf32>
    %168 = vector.extract_strided_slice %167 {offsets = [0, 0], sizes = [8, 128], strides = [1, 1]} : vector<8x512xf32> to vector<8x128xf32>
    %169 = arith.negf %168 : vector<8x128xf32>
    %170 = math.exp %169 : vector<8x128xf32>
    %cst_73 = arith.constant 1.000000e+00 : f32
    %171 = vector.broadcast %cst_73 : f32 to vector<8x128xf32>
    %172 = arith.addf %171, %170 : vector<8x128xf32>
    %173 = arith.divf %171, %172 : vector<8x128xf32>
    %174 = vector.extract_strided_slice %167 {offsets = [0, 128], sizes = [8, 128], strides = [1, 1]} : vector<8x512xf32> to vector<8x128xf32>
    %175 = arith.negf %174 : vector<8x128xf32>
    %176 = math.exp %175 : vector<8x128xf32>
    %cst_74 = arith.constant 1.000000e+00 : f32
    %177 = vector.broadcast %cst_74 : f32 to vector<8x128xf32>
    %178 = arith.addf %177, %176 : vector<8x128xf32>
    %179 = arith.divf %177, %178 : vector<8x128xf32>
    %180 = vector.extract_strided_slice %167 {offsets = [0, 256], sizes = [8, 128], strides = [1, 1]} : vector<8x512xf32> to vector<8x128xf32>
    %181 = math.tanh %180 : vector<8x128xf32>
    %182 = vector.extract_strided_slice %167 {offsets = [0, 384], sizes = [8, 128], strides = [1, 1]} : vector<8x512xf32> to vector<8x128xf32>
    %183 = arith.negf %182 : vector<8x128xf32>
    %184 = math.exp %183 : vector<8x128xf32>
    %cst_75 = arith.constant 1.000000e+00 : f32
    %185 = vector.broadcast %cst_75 : f32 to vector<8x128xf32>
    %186 = arith.addf %185, %184 : vector<8x128xf32>
    %187 = arith.divf %185, %186 : vector<8x128xf32>
    %c0_76 = arith.constant 0 : index
    %c0_77 = arith.constant 0 : index
    %188 = vector.load %arg11[%c0_76, %c0_77] : memref<8x128xf32, #tpu.memory_space<vmem>>, vector<8x128xf32>
    %189 = arith.mulf %179, %188 : vector<8x128xf32>
    %190 = arith.mulf %173, %181 : vector<8x128xf32>
    %191 = arith.addf %189, %190 : vector<8x128xf32>
    %192 = math.tanh %191 : vector<8x128xf32>
    %193 = arith.mulf %187, %192 : vector<8x128xf32>
    %c0_78 = arith.constant 0 : index
    %c0_79 = arith.constant 0 : index
    %194 = vector.load %arg10[%c0_78, %c0_79] : memref<8x128xf32, #tpu.memory_space<vmem>>, vector<8x128xf32>
    tpu.vector_store %arg10[%c0_78, %c0_79], %193 {strides = array<i32>} : memref<8x128xf32, #tpu.memory_space<vmem>>, vector<8x128xf32>,
    %c0_80 = arith.constant 0 : index
    %c0_81 = arith.constant 0 : index
    %195 = vector.load %arg11[%c0_80, %c0_81] : memref<8x128xf32, #tpu.memory_space<vmem>>, vector<8x128xf32>
    tpu.vector_store %arg11[%c0_80, %c0_81], %191 {strides = array<i32>} : memref<8x128xf32, #tpu.memory_space<vmem>>, vector<8x128xf32>,
    %196 = arith.index_cast %c4_i32 : i32 to index
    %c0_82 = arith.constant 0 : index
    %c0_83 = arith.constant 0 : index
    %197 = vector.load %arg7[%196, %c0_82, %c0_83] : memref<8x8x128xf32, #tpu.memory_space<vmem>>, vector<1x8x128xf32>
    %198 = vector.shape_cast %197 : vector<1x8x128xf32> to vector<8x128xf32>
    %199 = vector.shape_cast %193 : vector<8x128xf32> to vector<1x8x128xf32>
    tpu.vector_store %arg7[%196, %c0_82, %c0_83], %199 {strides = array<i32>} : memref<8x8x128xf32, #tpu.memory_space<vmem>>, vector<1x8x128xf32>,
    %c5_i32 = arith.constant 5 : i32
    %200 = arith.index_cast %c5_i32 : i32 to index
    %c0_84 = arith.constant 0 : index
    %c0_85 = arith.constant 0 : index
    %201 = vector.load %arg2[%200, %c0_84, %c0_85] : memref<8x8x128xf32, #tpu.memory_space<vmem>>, vector<1x8x128xf32>
    %202 = vector.shape_cast %201 : vector<1x8x128xf32> to vector<8x128xf32>
    %c0_86 = arith.constant 0 : index
    %c0_87 = arith.constant 0 : index
    %203 = vector.load %arg10[%c0_86, %c0_87] : memref<8x128xf32, #tpu.memory_space<vmem>>, vector<8x128xf32>
    %204 = tpu.concatenate %202, %203 in 1 : vector<8x128xf32>, vector<8x128xf32> -> vector<8x256xf32>
    %cst_88 = arith.constant dense<0.000000e+00> : vector<8x512xf32>
    %205 = tpu.matmul %204, %3, %cst_88 {dimension_numbers = #tpu.dot_dimension_numbers<[1], [0], [0], [1], [0, 0, 1, 1], [], []>} : vector<8x256xf32>, vector<256x512xf32>, vector<8x512xf32> -> vector<8x512xf32>
    %206 = arith.addf %205, %4 : vector<8x512xf32>
    %207 = vector.extract_strided_slice %206 {offsets = [0, 0], sizes = [8, 128], strides = [1, 1]} : vector<8x512xf32> to vector<8x128xf32>
    %208 = arith.negf %207 : vector<8x128xf32>
    %209 = math.exp %208 : vector<8x128xf32>
    %cst_89 = arith.constant 1.000000e+00 : f32
    %210 = vector.broadcast %cst_89 : f32 to vector<8x128xf32>
    %211 = arith.addf %210, %209 : vector<8x128xf32>
    %212 = arith.divf %210, %211 : vector<8x128xf32>
    %213 = vector.extract_strided_slice %206 {offsets = [0, 128], sizes = [8, 128], strides = [1, 1]} : vector<8x512xf32> to vector<8x128xf32>
    %214 = arith.negf %213 : vector<8x128xf32>
    %215 = math.exp %214 : vector<8x128xf32>
    %cst_90 = arith.constant 1.000000e+00 : f32
    %216 = vector.broadcast %cst_90 : f32 to vector<8x128xf32>
    %217 = arith.addf %216, %215 : vector<8x128xf32>
    %218 = arith.divf %216, %217 : vector<8x128xf32>
    %219 = vector.extract_strided_slice %206 {offsets = [0, 256], sizes = [8, 128], strides = [1, 1]} : vector<8x512xf32> to vector<8x128xf32>
    %220 = math.tanh %219 : vector<8x128xf32>
    %221 = vector.extract_strided_slice %206 {offsets = [0, 384], sizes = [8, 128], strides = [1, 1]} : vector<8x512xf32> to vector<8x128xf32>
    %222 = arith.negf %221 : vector<8x128xf32>
    %223 = math.exp %222 : vector<8x128xf32>
    %cst_91 = arith.constant 1.000000e+00 : f32
    %224 = vector.broadcast %cst_91 : f32 to vector<8x128xf32>
    %225 = arith.addf %224, %223 : vector<8x128xf32>
    %226 = arith.divf %224, %225 : vector<8x128xf32>
    %c0_92 = arith.constant 0 : index
    %c0_93 = arith.constant 0 : index
    %227 = vector.load %arg11[%c0_92, %c0_93] : memref<8x128xf32, #tpu.memory_space<vmem>>, vector<8x128xf32>
    %228 = arith.mulf %218, %227 : vector<8x128xf32>
    %229 = arith.mulf %212, %220 : vector<8x128xf32>
    %230 = arith.addf %228, %229 : vector<8x128xf32>
    %231 = math.tanh %230 : vector<8x128xf32>
    %232 = arith.mulf %226, %231 : vector<8x128xf32>
    %c0_94 = arith.constant 0 : index
    %c0_95 = arith.constant 0 : index
    %233 = vector.load %arg10[%c0_94, %c0_95] : memref<8x128xf32, #tpu.memory_space<vmem>>, vector<8x128xf32>
    tpu.vector_store %arg10[%c0_94, %c0_95], %232 {strides = array<i32>} : memref<8x128xf32, #tpu.memory_space<vmem>>, vector<8x128xf32>,
    %c0_96 = arith.constant 0 : index
    %c0_97 = arith.constant 0 : index
    %234 = vector.load %arg11[%c0_96, %c0_97] : memref<8x128xf32, #tpu.memory_space<vmem>>, vector<8x128xf32>
    tpu.vector_store %arg11[%c0_96, %c0_97], %230 {strides = array<i32>} : memref<8x128xf32, #tpu.memory_space<vmem>>, vector<8x128xf32>,
    %235 = arith.index_cast %c5_i32 : i32 to index
    %c0_98 = arith.constant 0 : index
    %c0_99 = arith.constant 0 : index
    %236 = vector.load %arg7[%235, %c0_98, %c0_99] : memref<8x8x128xf32, #tpu.memory_space<vmem>>, vector<1x8x128xf32>
    %237 = vector.shape_cast %236 : vector<1x8x128xf32> to vector<8x128xf32>
    %238 = vector.shape_cast %232 : vector<8x128xf32> to vector<1x8x128xf32>
    tpu.vector_store %arg7[%235, %c0_98, %c0_99], %238 {strides = array<i32>} : memref<8x8x128xf32, #tpu.memory_space<vmem>>, vector<1x8x128xf32>,
    %c6_i32 = arith.constant 6 : i32
    %239 = arith.index_cast %c6_i32 : i32 to index
    %c0_100 = arith.constant 0 : index
    %c0_101 = arith.constant 0 : index
    %240 = vector.load %arg2[%239, %c0_100, %c0_101] : memref<8x8x128xf32, #tpu.memory_space<vmem>>, vector<1x8x128xf32>
    %241 = vector.shape_cast %240 : vector<1x8x128xf32> to vector<8x128xf32>
    %c0_102 = arith.constant 0 : index
    %c0_103 = arith.constant 0 : index
    %242 = vector.load %arg10[%c0_102, %c0_103] : memref<8x128xf32, #tpu.memory_space<vmem>>, vector<8x128xf32>
    %243 = tpu.concatenate %241, %242 in 1 : vector<8x128xf32>, vector<8x128xf32> -> vector<8x256xf32>
    %cst_104 = arith.constant dense<0.000000e+00> : vector<8x512xf32>
    %244 = tpu.matmul %243, %3, %cst_104 {dimension_numbers = #tpu.dot_dimension_numbers<[1], [0], [0], [1], [0, 0, 1, 1], [], []>} : vector<8x256xf32>, vector<256x512xf32>, vector<8x512xf32> -> vector<8x512xf32>
    %245 = arith.addf %244, %4 : vector<8x512xf32>
    %246 = vector.extract_strided_slice %245 {offsets = [0, 0], sizes = [8, 128], strides = [1, 1]} : vector<8x512xf32> to vector<8x128xf32>
    %247 = arith.negf %246 : vector<8x128xf32>
    %248 = math.exp %247 : vector<8x128xf32>
    %cst_105 = arith.constant 1.000000e+00 : f32
    %249 = vector.broadcast %cst_105 : f32 to vector<8x128xf32>
    %250 = arith.addf %249, %248 : vector<8x128xf32>
    %251 = arith.divf %249, %250 : vector<8x128xf32>
    %252 = vector.extract_strided_slice %245 {offsets = [0, 128], sizes = [8, 128], strides = [1, 1]} : vector<8x512xf32> to vector<8x128xf32>
    %253 = arith.negf %252 : vector<8x128xf32>
    %254 = math.exp %253 : vector<8x128xf32>
    %cst_106 = arith.constant 1.000000e+00 : f32
    %255 = vector.broadcast %cst_106 : f32 to vector<8x128xf32>
    %256 = arith.addf %255, %254 : vector<8x128xf32>
    %257 = arith.divf %255, %256 : vector<8x128xf32>
    %258 = vector.extract_strided_slice %245 {offsets = [0, 256], sizes = [8, 128], strides = [1, 1]} : vector<8x512xf32> to vector<8x128xf32>
    %259 = math.tanh %258 : vector<8x128xf32>
    %260 = vector.extract_strided_slice %245 {offsets = [0, 384], sizes = [8, 128], strides = [1, 1]} : vector<8x512xf32> to vector<8x128xf32>
    %261 = arith.negf %260 : vector<8x128xf32>
    %262 = math.exp %261 : vector<8x128xf32>
    %cst_107 = arith.constant 1.000000e+00 : f32
    %263 = vector.broadcast %cst_107 : f32 to vector<8x128xf32>
    %264 = arith.addf %263, %262 : vector<8x128xf32>
    %265 = arith.divf %263, %264 : vector<8x128xf32>
    %c0_108 = arith.constant 0 : index
    %c0_109 = arith.constant 0 : index
    %266 = vector.load %arg11[%c0_108, %c0_109] : memref<8x128xf32, #tpu.memory_space<vmem>>, vector<8x128xf32>
    %267 = arith.mulf %257, %266 : vector<8x128xf32>
    %268 = arith.mulf %251, %259 : vector<8x128xf32>
    %269 = arith.addf %267, %268 : vector<8x128xf32>
    %270 = math.tanh %269 : vector<8x128xf32>
    %271 = arith.mulf %265, %270 : vector<8x128xf32>
    %c0_110 = arith.constant 0 : index
    %c0_111 = arith.constant 0 : index
    %272 = vector.load %arg10[%c0_110, %c0_111] : memref<8x128xf32, #tpu.memory_space<vmem>>, vector<8x128xf32>
    tpu.vector_store %arg10[%c0_110, %c0_111], %271 {strides = array<i32>} : memref<8x128xf32, #tpu.memory_space<vmem>>, vector<8x128xf32>,
    %c0_112 = arith.constant 0 : index
    %c0_113 = arith.constant 0 : index
    %273 = vector.load %arg11[%c0_112, %c0_113] : memref<8x128xf32, #tpu.memory_space<vmem>>, vector<8x128xf32>
    tpu.vector_store %arg11[%c0_112, %c0_113], %269 {strides = array<i32>} : memref<8x128xf32, #tpu.memory_space<vmem>>, vector<8x128xf32>,
    %274 = arith.index_cast %c6_i32 : i32 to index
    %c0_114 = arith.constant 0 : index
    %c0_115 = arith.constant 0 : index
    %275 = vector.load %arg7[%274, %c0_114, %c0_115] : memref<8x8x128xf32, #tpu.memory_space<vmem>>, vector<1x8x128xf32>
    %276 = vector.shape_cast %275 : vector<1x8x128xf32> to vector<8x128xf32>
    %277 = vector.shape_cast %271 : vector<8x128xf32> to vector<1x8x128xf32>
    tpu.vector_store %arg7[%274, %c0_114, %c0_115], %277 {strides = array<i32>} : memref<8x8x128xf32, #tpu.memory_space<vmem>>, vector<1x8x128xf32>,
    %c7_i32 = arith.constant 7 : i32
    %278 = arith.index_cast %c7_i32 : i32 to index
    %c0_116 = arith.constant 0 : index
    %c0_117 = arith.constant 0 : index
    %279 = vector.load %arg2[%278, %c0_116, %c0_117] : memref<8x8x128xf32, #tpu.memory_space<vmem>>, vector<1x8x128xf32>
    %280 = vector.shape_cast %279 : vector<1x8x128xf32> to vector<8x128xf32>
    %c0_118 = arith.constant 0 : index
    %c0_119 = arith.constant 0 : index
    %281 = vector.load %arg10[%c0_118, %c0_119] : memref<8x128xf32, #tpu.memory_space<vmem>>, vector<8x128xf32>
    %282 = tpu.concatenate %280, %281 in 1 : vector<8x128xf32>, vector<8x128xf32> -> vector<8x256xf32>
    %cst_120 = arith.constant dense<0.000000e+00> : vector<8x512xf32>
    %283 = tpu.matmul %282, %3, %cst_120 {dimension_numbers = #tpu.dot_dimension_numbers<[1], [0], [0], [1], [0, 0, 1, 1], [], []>} : vector<8x256xf32>, vector<256x512xf32>, vector<8x512xf32> -> vector<8x512xf32>
    %284 = arith.addf %283, %4 : vector<8x512xf32>
    %285 = vector.extract_strided_slice %284 {offsets = [0, 0], sizes = [8, 128], strides = [1, 1]} : vector<8x512xf32> to vector<8x128xf32>
    %286 = arith.negf %285 : vector<8x128xf32>
    %287 = math.exp %286 : vector<8x128xf32>
    %cst_121 = arith.constant 1.000000e+00 : f32
    %288 = vector.broadcast %cst_121 : f32 to vector<8x128xf32>
    %289 = arith.addf %288, %287 : vector<8x128xf32>
    %290 = arith.divf %288, %289 : vector<8x128xf32>
    %291 = vector.extract_strided_slice %284 {offsets = [0, 128], sizes = [8, 128], strides = [1, 1]} : vector<8x512xf32> to vector<8x128xf32>
    %292 = arith.negf %291 : vector<8x128xf32>
    %293 = math.exp %292 : vector<8x128xf32>
    %cst_122 = arith.constant 1.000000e+00 : f32
    %294 = vector.broadcast %cst_122 : f32 to vector<8x128xf32>
    %295 = arith.addf %294, %293 : vector<8x128xf32>
    %296 = arith.divf %294, %295 : vector<8x128xf32>
    %297 = vector.extract_strided_slice %284 {offsets = [0, 256], sizes = [8, 128], strides = [1, 1]} : vector<8x512xf32> to vector<8x128xf32>
    %298 = math.tanh %297 : vector<8x128xf32>
    %299 = vector.extract_strided_slice %284 {offsets = [0, 384], sizes = [8, 128], strides = [1, 1]} : vector<8x512xf32> to vector<8x128xf32>
    %300 = arith.negf %299 : vector<8x128xf32>
    %301 = math.exp %300 : vector<8x128xf32>
    %cst_123 = arith.constant 1.000000e+00 : f32
    %302 = vector.broadcast %cst_123 : f32 to vector<8x128xf32>
    %303 = arith.addf %302, %301 : vector<8x128xf32>
    %304 = arith.divf %302, %303 : vector<8x128xf32>
    %c0_124 = arith.constant 0 : index
    %c0_125 = arith.constant 0 : index
    %305 = vector.load %arg11[%c0_124, %c0_125] : memref<8x128xf32, #tpu.memory_space<vmem>>, vector<8x128xf32>
    %306 = arith.mulf %296, %305 : vector<8x128xf32>
    %307 = arith.mulf %290, %298 : vector<8x128xf32>
    %308 = arith.addf %306, %307 : vector<8x128xf32>
    %309 = math.tanh %308 : vector<8x128xf32>
    %310 = arith.mulf %304, %309 : vector<8x128xf32>
    %c0_126 = arith.constant 0 : index
    %c0_127 = arith.constant 0 : index
    %311 = vector.load %arg10[%c0_126, %c0_127] : memref<8x128xf32, #tpu.memory_space<vmem>>, vector<8x128xf32>
    tpu.vector_store %arg10[%c0_126, %c0_127], %310 {strides = array<i32>} : memref<8x128xf32, #tpu.memory_space<vmem>>, vector<8x128xf32>,
    %c0_128 = arith.constant 0 : index
    %c0_129 = arith.constant 0 : index
    %312 = vector.load %arg11[%c0_128, %c0_129] : memref<8x128xf32, #tpu.memory_space<vmem>>, vector<8x128xf32>
    tpu.vector_store %arg11[%c0_128, %c0_129], %308 {strides = array<i32>} : memref<8x128xf32, #tpu.memory_space<vmem>>, vector<8x128xf32>,
    %313 = arith.index_cast %c7_i32 : i32 to index
    %c0_130 = arith.constant 0 : index
    %c0_131 = arith.constant 0 : index
    %314 = vector.load %arg7[%313, %c0_130, %c0_131] : memref<8x8x128xf32, #tpu.memory_space<vmem>>, vector<1x8x128xf32>
    %315 = vector.shape_cast %314 : vector<1x8x128xf32> to vector<8x128xf32>
    %316 = vector.shape_cast %310 : vector<8x128xf32> to vector<1x8x128xf32>
    tpu.vector_store %arg7[%313, %c0_130, %c0_131], %316 {strides = array<i32>} : memref<8x8x128xf32, #tpu.memory_space<vmem>>, vector<1x8x128xf32>,
    %c8_i32 = arith.constant 8 : i32
    %c0_i32_132 = arith.constant 0 : i32
    %317 = arith.cmpi eq, %arg1, %c0_i32_132 : i32
    %318 = arith.extui %317 : i1 to i32
    %c0_i32_133 = arith.constant 0 : i32
    %319 = arith.cmpi ne, %318, %c0_i32_133 : i32
    scf.if %319 {
      %c0_134 = arith.constant 0 : index
      %c0_135 = arith.constant 0 : index
      %320 = vector.load %arg10[%c0_134, %c0_135] : memref<8x128xf32, #tpu.memory_space<vmem>>, vector<8x128xf32>
      %c0_136 = arith.constant 0 : index
      %c0_137 = arith.constant 0 : index
      %321 = vector.load %arg8[%c0_136, %c0_137] : memref<8x128xf32, #tpu.memory_space<vmem>>, vector<8x128xf32>
      tpu.vector_store %arg8[%c0_136, %c0_137], %320 {strides = array<i32>} : memref<8x128xf32, #tpu.memory_space<vmem>>, vector<8x128xf32>,
      %c0_138 = arith.constant 0 : index
      %c0_139 = arith.constant 0 : index
      %322 = vector.load %arg11[%c0_138, %c0_139] : memref<8x128xf32, #tpu.memory_space<vmem>>, vector<8x128xf32>
      %c0_140 = arith.constant 0 : index
      %c0_141 = arith.constant 0 : index
      %323 = vector.load %arg9[%c0_140, %c0_141] : memref<8x128xf32, #tpu.memory_space<vmem>>, vector<8x128xf32>
      tpu.vector_store %arg9[%c0_140, %c0_141], %322 {strides = array<i32>} : memref<8x128xf32, #tpu.memory_space<vmem>>, vector<8x128xf32>,
    } else {
    }
    return
  }
  func.func @transform_0(%arg0: i32, %arg1: i32) -> (i32, i32, i32) {
    %c0_i32 = arith.constant 0 : i32
    %c0_i32_0 = arith.constant 0 : i32
    return %arg1, %arg0, %c0_i32 : i32, i32, i32
  }
  func.func @transform_1(%arg0: i32, %arg1: i32) -> (i32, i32) {
    %c0_i32 = arith.constant 0 : i32
    %c0_i32_0 = arith.constant 0 : i32
    return %arg0, %c0_i32 : i32, i32
  }
  func.func @transform_2(%arg0: i32, %arg1: i32) -> (i32, i32) {
    %c0_i32 = arith.constant 0 : i32
    %c0_i32_0 = arith.constant 0 : i32
    return %arg0, %c0_i32 : i32, i32
  }
  func.func @transform_3(%arg0: i32, %arg1: i32) -> (i32, i32) {
    %c0_i32 = arith.constant 0 : i32
    %c0_i32_0 = arith.constant 0 : i32
    %c0_i32_1 = arith.constant 0 : i32
    return %c0_i32, %c0_i32_0 : i32, i32
  }
  func.func @transform_4(%arg0: i32, %arg1: i32) -> (i32, i32) {
    %c0_i32 = arith.constant 0 : i32
    %c0_i32_0 = arith.constant 0 : i32
    %c0_i32_1 = arith.constant 0 : i32
    return %c0_i32, %c0_i32_0 : i32, i32
  }
  func.func @transform_5(%arg0: i32, %arg1: i32) -> (i32, i32, i32) {
    %c0_i32 = arith.constant 0 : i32
    %c0_i32_0 = arith.constant 0 : i32
    return %arg1, %arg0, %c0_i32 : i32, i32, i32
  }
  func.func @transform_6(%arg0: i32, %arg1: i32) -> (i32, i32) {
    %c0_i32 = arith.constant 0 : i32
    %c0_i32_0 = arith.constant 0 : i32
    return %arg0, %c0_i32 : i32, i32
  }
  func.func @transform_7(%arg0: i32, %arg1: i32) -> (i32, i32) {
    %c0_i32 = arith.constant 0 : i32
    %c0_i32_0 = arith.constant 0 : i32
    return %arg0, %c0_i32 : i32, i32
  }
}

</mosaic_0001>

<bundles_post_ra>
// kernel: tpu_custom_call.1
= control target key start
LH: loop header
LB: loop body
LE: loop exit
PB: predicated region body
PF: predicated region fallthrough
CT: control target
= control target key end

     0   :  { %13 = vsyncpa [#allocation5], 0  ;;  %s3935_s0 = inlined_call_operand.hbm [shape: f32[8,8,128], index: 0, kind: input, shape index: {}]   ;;  %s3936_s1 = inlined_call_operand.hbm [shape: f32[8,128], index: 1, kind: input, shape index: {}]   ;;  %s3937_s2 = inlined_call_operand.hbm [shape: f32[8,128], index: 2, kind: input, shape index: {}]   ;;  %s3938_s3 = inlined_call_operand.hbm [shape: f32[256,512], index: 3, kind: input, shape index: {}]   ;;  %s3939_s4 = inlined_call_operand.hbm [shape: f32[8,512], index: 4, kind: input, shape index: {}]   ;;  %s3940_s5 = inlined_call_operand.hbm [shape: f32[8,8,128], index: 5, kind: output, shape index: {0}]   ;;  %s3941_s6 = inlined_call_operand.hbm [shape: f32[8,128], index: 6, kind: output, shape index: {1}]   ;;  %s3942_s7 = inlined_call_operand.hbm [shape: f32[8,128], index: 7, kind: output, shape index: {2}]  }
   0x1   :  { %14 = vsyncpa [#allocation8], 0 }
   0x2   :  { %15 = vsyncpa [#allocation11], 0 }
   0x3   :  { %16 = vsyncpa [#allocation6], 0 }
   0x4   :  { %17 = vsyncpa [#allocation15], 0  ;;  %s3048_s24 = smov [#allocation7]   ;;  %s3049_s26 = smov [#allocation10]  }
   0x5   :  { %s36_s25 = sshll.u32 %s3048_s24, 4  ;;  %s55_s27 = sshll.u32 %s3049_s26, 4  ;;  %s37_s25 = int_to_ptr.vmem [resolvable:$true] %s36_s25  ;;  %s3100_s27 = int_to_ptr.vmem [resolvable:$true] %s55_s27 }
   0x6   :  { %s2862_s30 = scalar_lea.hbm %s3936_s1, 128 }
   0x7   :  { %p2863_p0 = scmp.ne.s32.totalorder %s3936_s1, %s2862_s30  ;;  %p2866_p1 = scmp.lt.u32.totalorder %s2862_s30, %s3936_s1 }
   0x9   :  { %p2868_p2 = pnand %p2866_p1, %p2863_p0 }
   0xb   :  { %2871 = shalt.err (!%p2868_p2)
}
   0xc   :  { %s2872_s12 = scalar_lea.vmem %s37_s25, 128  ;;  %p2877_p4 = scmp.lt.s32.totalorder %s37_s25, %s37_s25 }
   0xd   :  { %p2873_p3 = scmp.ne.s32.totalorder %s37_s25, %s2872_s12  ;;  %p2878_p5 = scmp.lt.s32.totalorder %s2872_s12, %s2872_s12 }
   0xf   :  { %p2879_p6 = por %p2878_p5, %p2877_p4 }
  0x11   :  { %p2880_p7 = pnand %p2879_p6, %p2873_p3 }
  0x13   :  { %2883 = shalt.err (!%p2880_p7)
}
  0x14   :  { %39 = dma.hbm_to_vmem [thread:$0]  %s3936_s1, 128, %s37_s25, [#allocation8]  }
  0x15   :  { %s2884_s17 = scalar_lea.hbm %s3938_s3, 16384 }
  0x16   :  { %p2885_p8 = scmp.ne.s32.totalorder %s3938_s3, %s2884_s17  ;;  %p2888_p9 = scmp.lt.u32.totalorder %s2884_s17, %s3938_s3 }
  0x18   :  { %p2890_p10 = pnand %p2888_p9, %p2885_p8 }
  0x1a   :  { %2893 = shalt.err (!%p2890_p10)
}
  0x1b   :  { %s2894_s22 = scalar_lea.vmem %s3100_s27, 16384  ;;  %p2899_p12 = scmp.lt.s32.totalorder %s3100_s27, %s3100_s27 }
  0x1c   :  { %p2895_p11 = scmp.ne.s32.totalorder %s3100_s27, %s2894_s22  ;;  %p2900_p13 = scmp.lt.s32.totalorder %s2894_s22, %s2894_s22 }
  0x1e   :  { %p2901_p0 = por %p2900_p13, %p2899_p12 }
  0x20   :  { %p2902_p1 = pnand %p2901_p0, %p2895_p11 }
  0x22   :  { %2905 = shalt.err (!%p2902_p1)
}
  0x23   :  { %s3050_s1 = smov 512   ;;  %s3051_s23 = smov 32  }
  0x24   :  { %61 = dma.hbm_to_vmem [thread:$0]  %s3938_s3, 16384, %s3100_s27, [#allocation11], %s3050_s1, %s3050_s1, %s3051_s23  }
  0x25   :  { %s3052_s26 = smov [#allocation4]   ;;  %s2906_s8 = scalar_lea.hbm %s3935_s0, 1024 }
  0x26   :  { %s23_s28 = sshll.u32 %s3052_s26, 4  ;;  %p2907_p2 = scmp.ne.s32.totalorder %s3935_s0, %s2906_s8  ;;  %s24_s28 = int_to_ptr.vmem [resolvable:$true] %s23_s28 }
  0x27   :  { %p2910_p3 = scmp.lt.u32.totalorder %s2906_s8, %s3935_s0 }
  0x29   :  { %p2912_p4 = pnand %p2910_p3, %p2907_p2 }
  0x2b   :  { %2915 = shalt.err (!%p2912_p4)
}
  0x2c   :  { %s2916_s13 = scalar_lea.vmem %s24_s28, 1024  ;;  %p2921_p6 = scmp.lt.s32.totalorder %s24_s28, %s24_s28 }
  0x2d   :  { %p2917_p5 = scmp.ne.s32.totalorder %s24_s28, %s2916_s13  ;;  %p2922_p7 = scmp.lt.s32.totalorder %s2916_s13, %s2916_s13 }
  0x2f   :  { %p2923_p8 = por %p2922_p7, %p2921_p6 }
  0x31   :  { %p2924_p9 = pnand %p2923_p8, %p2917_p5 }
  0x33   :  { %2927 = shalt.err (!%p2924_p9)
}
  0x34   :  { %s3053_s3 = smov 128   ;;  %s3054_s27 = smov 8  }
  0x35   :  { %29 = dma.hbm_to_vmem [thread:$0]  %s3935_s0, 1024, %s24_s28, [#allocation5], %s3053_s3, %s3053_s3, %s3054_s27  }
  0x36   :  { %s3055_s16 = smov [#allocation9]   ;;  %s3056_s18 = smov [#allocation12]  }
  0x37   :  { %s46_s17 = sshll.u32 %s3055_s16, 4  ;;  %s68_s19 = sshll.u32 %s3056_s18, 4  ;;  %s47_s17 = int_to_ptr.vmem [resolvable:$true] %s46_s17  ;;  %s69_s19 = int_to_ptr.vmem [resolvable:$true] %s68_s19 }
  0x38   :  { %s2928_s22 = scalar_lea.hbm %s3937_s2, 128 }
  0x39   :  { %p2929_p10 = scmp.ne.s32.totalorder %s3937_s2, %s2928_s22  ;;  %p2932_p11 = scmp.lt.u32.totalorder %s2928_s22, %s3937_s2 }
  0x3b   :  { %p2934_p12 = pnand %p2932_p11, %p2929_p10 }
  0x3d   :  { %2937 = shalt.err (!%p2934_p12)
}
  0x3e   :  { %s2938_s0 = scalar_lea.vmem %s47_s17, 128  ;;  %p2943_p0 = scmp.lt.s32.totalorder %s47_s17, %s47_s17 }
  0x3f   :  { %p2939_p13 = scmp.ne.s32.totalorder %s47_s17, %s2938_s0  ;;  %p2944_p1 = scmp.lt.s32.totalorder %s2938_s0, %s2938_s0 }
  0x41   :  { %p2945_p2 = por %p2944_p1, %p2943_p0 }
  0x43   :  { %p2946_p3 = pnand %p2945_p2, %p2939_p13 }
  0x45   :  { %2949 = shalt.err (!%p2946_p3)
}
  0x46   :  { %49 = dma.hbm_to_vmem [thread:$0]  %s3937_s2, 128, %s47_s17, [#allocation8]  }
  0x47   :  { %s2950_s8 = scalar_lea.hbm %s3939_s4, 512 }
  0x48   :  { %p2951_p4 = scmp.ne.s32.totalorder %s3939_s4, %s2950_s8  ;;  %p2954_p5 = scmp.lt.u32.totalorder %s2950_s8, %s3939_s4 }
  0x4a   :  { %p2956_p6 = pnand %p2954_p5, %p2951_p4 }
  0x4c   :  { %2959 = shalt.err (!%p2956_p6)
}
  0x4d   :  { %s2960_s13 = scalar_lea.vmem %s69_s19, 512  ;;  %p2965_p8 = scmp.lt.s32.totalorder %s69_s19, %s69_s19 }
  0x4e   :  { %p2961_p7 = scmp.ne.s32.totalorder %s69_s19, %s2960_s13  ;;  %p2966_p9 = scmp.lt.s32.totalorder %s2960_s13, %s2960_s13 }
  0x50   :  { %p2967_p10 = por %p2966_p9, %p2965_p8 }
  0x52   :  { %p2968_p11 = pnand %p2967_p10, %p2961_p7 }
  0x54   :  { %2971 = shalt.err (!%p2968_p11)
}
  0x55   :  { %71 = dma.hbm_to_vmem [thread:$0]  %s3939_s4, 512, %s69_s19, [#allocation11]  }
  0x56   :  { %3038 = dma.done.wait [#allocation5], 1024  }
  0x57   :  { %3039 = vsyncadd [#allocation5], 4294966272 }
  0x58   :  { %3040 = dma.done.wait [#allocation8], 256  }
  0x59   :  { %3041 = vsyncadd [#allocation8], 4294967040 }
  0x5a   :  { %3042 = dma.done.wait [#allocation11], 16896  }
  0x5b   :  { %3043 = vsyncadd [#allocation11], 4294950400  ;;  %v96_v0 = vld [vmem:[#allocation10 + $0x8] sm:$0xff]  ;;  %v95_v2 = vld [vmem:[#allocation10] sm:$0xff]  ;;  %s3057_s4 = smov [#allocation14]   ;;  %s3058_s16 = smov [#allocation13]  }
  0x5c   :  { %v100_v1 = vld [vmem:[#allocation10 + $0x28] sm:$0xff]  ;;  %v99_v4 = vld [vmem:[#allocation10 + $0x20] sm:$0xff]  ;;  %v98_v18 = vld [vmem:[#allocation10 + $0x18] sm:$0xff]  ;;  %s1642_s15 = sshll.u32 %s3057_s4, 4  ;;  %s1629_s17 = sshll.u32 %s3058_s16, 4  ;;  %s1643_s15 = int_to_ptr.vmem [resolvable:$true] %s1642_s15  ;;  %s3882_s17 = int_to_ptr.vmem [resolvable:$true] %s1629_s17 }
  0x5d   :  { %v3170_v3 = vpack.c.bf16 %v100_v1, %v96_v0  ;;  %v104_v5 = vld [vmem:[#allocation10 + $0x48] sm:$0xff]  ;;  %v3172_v7 = vpack.c.bf16 %v99_v4, %v95_v2  ;;  %v103_v9 = vld [vmem:[#allocation10 + $0x40] sm:$0xff]  ;;  %v102_v19 = vld [vmem:[#allocation10 + $0x38] sm:$0xff]  ;;  %s3059_s18 = smov [#allocation16]   ;;  %s2972_s20 = scalar_lea.vmem %s1643_s15, 128 }
  0x5e   :  { %v108_v6 = vld [vmem:[#allocation10 + $0x68] sm:$0xff]  ;;  %v107_v10 = vld [vmem:[#allocation10 + $0x60] sm:$0xff]  ;;  %v3183_v21 = vpack.c.bf16 %v102_v19, %v98_v18  ;;  %v97_v22 = vld [vmem:[#allocation10 + $0x10] sm:$0xff]  ;;  %s1652_s19 = sshll.u32 %s3059_s18, 4  ;;  %p2973_p12 = scmp.ne.s32.totalorder %s1643_s15, %s2972_s20  ;;  %s3884_s19 = int_to_ptr.vmem [resolvable:$true] %s1652_s19 }
  0x5f   :  { %4001 = vst [vmem:[#allocation22_spill] sm:$0xff] %v3170_v3  ;;  %v3174_v8 = vpack.c.bf16 %v108_v6, %v104_v5  ;;  %v112_v11 = vld [vmem:[#allocation10 + $0x88] sm:$0xff]  ;;  %1695 = vmatprep.subr.bf16.mxu0 %v3170_v3  ;;  %v3178_v13 = vpack.c.bf16 %v107_v10, %v103_v9  ;;  %v111_v14 = vld [vmem:[#allocation10 + $0x80] sm:$0xff]  ;;  %v101_v23 = vld [vmem:[#allocation10 + $0x30] sm:$0xff]  ;;  %p2977_p13 = scmp.lt.s32.totalorder %s1643_s15, %s1643_s15  ;;  %p2978_p0 = scmp.lt.s32.totalorder %s2972_s20, %s2972_s20 }
  0x60   :  { %v116_v12 = vld [vmem:[#allocation10 + $0xa8] sm:$0xff]  ;;  %1697 = vmatpush1.bf16.msra.mxu0 %v3172_v7  ;;  %v115_v15 = vld [vmem:[#allocation10 + $0xa0] sm:$0xff]  ;;  %4002 = vst [vmem:[#allocation23_spill] sm:$0xff] %v3183_v21  ;;  %v3185_v24 = vpack.c.bf16 %v101_v23, %v97_v22  ;;  %1759 = vmatprep.subr.bf16.mxu1 %v3183_v21  ;;  %v106_v26 = vld [vmem:[#allocation10 + $0x58] sm:$0xff] }
  0x61   :  { %1699 = vmatprep.subr.bf16.mxu0 %v3174_v8  ;;  %v3181_v16 = vpack.c.bf16 %v116_v12, %v112_v11  ;;  %v120_v17 = vld [vmem:[#allocation10 + $0xc8] sm:$0xff]  ;;  %v3188_v25 = vpack.c.bf16 %v115_v15, %v111_v14  ;;  %v110_v27 = vld [vmem:[#allocation10 + $0x78] sm:$0xff]  ;;  %v105_v28 = vld [vmem:[#allocation10 + $0x50] sm:$0xff]  ;;  %p2979_p1 = por %p2978_p0, %p2977_p13 }
  0x62   :  { %v124_v20 = vld [vmem:[#allocation10 + $0xe8] sm:$0xff]  ;;  %v119_v30 = vld [vmem:[#allocation10 + $0xc0] sm:$0xff]  ;;  %1761 = vmatpush1.bf16.msra.mxu1 %v3185_v24  ;;  %v3195_v32 = vpack.c.bf16 %v110_v27, %v106_v26  ;;  %v109_v33 = vld [vmem:[#allocation10 + $0x70] sm:$0xff] }
  0x63   :  { %v3192_v29 = vpack.c.bf16 %v124_v20, %v120_v17  ;;  %v123_v31 = vld [vmem:[#allocation10 + $0xe0] sm:$0xff]  ;;  %v128_v34 = vld [vmem:[#allocation10 + $0x108] sm:$0xff]  ;;  %v3197_v36 = vpack.c.bf16 %v109_v33, %v105_v28  ;;  %v114_v37 = vld [vmem:[#allocation10 + $0x98] sm:$0xff]  ;;  %p2980_p2 = pnand %p2979_p1, %p2973_p12 }
  0x64   :  { %1701 = vmatpush1.bf16.msra.mxu0 %v3178_v13  ;;  %v132_v35 = vld [vmem:[#allocation10 + $0x128] sm:$0xff]  ;;  %1763 = vmatprep.subr.bf16.mxu1 %v3195_v32  ;;  %v118_v38 = vld [vmem:[#allocation10 + $0xb8] sm:$0xff]  ;;  %v113_v39 = vld [vmem:[#allocation10 + $0x90] sm:$0xff]  ;;  %v3201_v41 = vpack.c.bf16 %v123_v31, %v119_v30 }
  0x65   :  { %1703 = vmatprep.subr.bf16.mxu0 %v3181_v16  ;;  %v117_v40 = vld [vmem:[#allocation10 + $0xb0] sm:$0xff]  ;;  %v127_v42 = vld [vmem:[#allocation10 + $0x100] sm:$0xff]  ;;  %v3203_v44 = vpack.c.bf16 %v118_v38, %v114_v37  ;;  %v3206_v45 = vpack.c.bf16 %v132_v35, %v128_v34  ;;  %v136_v46 = vld [vmem:[#allocation10 + $0x148] sm:$0xff] }
  0x66   :  { %v131_v43 = vld [vmem:[#allocation10 + $0x120] sm:$0xff]  ;;  %1765 = vmatpush1.bf16.msra.mxu1 %v3197_v36  ;;  %v3209_v47 = vpack.c.bf16 %v117_v40, %v113_v39  ;;  %v122_v48 = vld [vmem:[#allocation10 + $0xd8] sm:$0xff]  ;;  %v140_v50 = vld [vmem:[#allocation10 + $0x168] sm:$0xff] }
  0x67   :  { %v126_v49 = vld [vmem:[#allocation10 + $0xf8] sm:$0xff]  ;;  %1767 = vmatprep.subr.bf16.mxu1 %v3203_v44  ;;  %v121_v52 = vld [vmem:[#allocation10 + $0xd0] sm:$0xff]  ;;  %v3215_v54 = vpack.c.bf16 %v131_v43, %v127_v42  ;;  %v3218_v57 = vpack.c.bf16 %v140_v50, %v136_v46  ;;  %v135_v58 = vld [vmem:[#allocation10 + $0x140] sm:$0xff] }
  0x68   :  { %1705 = vmatpush1.bf16.msra.mxu0 %v3188_v25  ;;  %v3212_v51 = vpack.c.bf16 %v126_v49, %v122_v48  ;;  %v125_v53 = vld [vmem:[#allocation10 + $0xf0] sm:$0xff]  ;;  %v130_v55 = vld [vmem:[#allocation10 + $0x118] sm:$0xff]  ;;  %v139_v59 = vld [vmem:[#allocation10 + $0x160] sm:$0xff] }
  0x69   :  { %1707 = vmatprep.subr.bf16.mxu0 %v3192_v29  ;;  %v134_v56 = vld [vmem:[#allocation10 + $0x138] sm:$0xff]  ;;  %v144_v60 = vld [vmem:[#allocation10 + $0x188] sm:$0xff]  ;;  %v3221_v61 = vpack.c.bf16 %v125_v53, %v121_v52  ;;  %v129_v0 = vld [vmem:[#allocation10 + $0x110] sm:$0xff]  ;;  %v3227_v5 = vpack.c.bf16 %v139_v59, %v135_v58 }
  0x6a   :  { %1769 = vmatpush1.bf16.msra.mxu1 %v3209_v47  ;;  %v148_v62 = vld [vmem:[#allocation10 + $0x1a8] sm:$0xff]  ;;  %v3224_v63 = vpack.c.bf16 %v134_v56, %v130_v55  ;;  %v133_v1 = vld [vmem:[#allocation10 + $0x130] sm:$0xff]  ;;  %v138_v2 = vld [vmem:[#allocation10 + $0x158] sm:$0xff] }
  0x6b   :  { %1771 = vmatprep.subr.bf16.mxu1 %v3212_v51  ;;  %v142_v4 = vld [vmem:[#allocation10 + $0x178] sm:$0xff]  ;;  %v3230_v6 = vpack.c.bf16 %v148_v62, %v144_v60  ;;  %v143_v9 = vld [vmem:[#allocation10 + $0x180] sm:$0xff]  ;;  %v152_v11 = vld [vmem:[#allocation10 + $0x1c8] sm:$0xff]  ;;  %v3233_v12 = vpack.c.bf16 %v133_v1, %v129_v0 }
  0x6c   :  { %1709 = vmatpush1.bf16.msra.mxu0 %v3201_v41  ;;  %v147_v10 = vld [vmem:[#allocation10 + $0x1a0] sm:$0xff]  ;;  %v156_v14 = vld [vmem:[#allocation10 + $0x1e8] sm:$0xff]  ;;  %v3236_v15 = vpack.c.bf16 %v142_v4, %v138_v2  ;;  %v137_v17 = vld [vmem:[#allocation10 + $0x150] sm:$0xff] }
  0x6d   :  { %1711 = vmatprep.subr.bf16.mxu0 %v3206_v45  ;;  %v141_v18 = vld [vmem:[#allocation10 + $0x170] sm:$0xff]  ;;  %v146_v19 = vld [vmem:[#allocation10 + $0x198] sm:$0xff]  ;;  %v3239_v22 = vpack.c.bf16 %v147_v10, %v143_v9  ;;  %v3242_v23 = vpack.c.bf16 %v156_v14, %v152_v11  ;;  %v151_v26 = vld [vmem:[#allocation10 + $0x1c0] sm:$0xff] }
  0x6e   :  { %1773 = vmatpush1.bf16.msra.mxu1 %v3221_v61  ;;  %v150_v20 = vld [vmem:[#allocation10 + $0x1b8] sm:$0xff]  ;;  %v155_v27 = vld [vmem:[#allocation10 + $0x1e0] sm:$0xff]  ;;  %v160_v28 = vld [vmem:[#allocation10 + $0x208] sm:$0xff]  ;;  %v3245_v30 = vpack.c.bf16 %v141_v18, %v137_v17 }
  0x6f   :  { %1775 = vmatprep.subr.bf16.mxu1 %v3224_v63  ;;  %v164_v31 = vld [vmem:[#allocation10 + $0x228] sm:$0xff]  ;;  %v3248_v33 = vpack.c.bf16 %v150_v20, %v146_v19  ;;  %v145_v34 = vld [vmem:[#allocation10 + $0x190] sm:$0xff]  ;;  %v154_v37 = vld [vmem:[#allocation10 + $0x1d8] sm:$0xff]  ;;  %v3251_v39 = vpack.c.bf16 %v155_v27, %v151_v26 }
  0x70   :  { %1713 = vmatpush1.bf16.msra.mxu0 %v3215_v54  ;;  %v149_v35 = vld [vmem:[#allocation10 + $0x1b0] sm:$0xff]  ;;  %v158_v38 = vld [vmem:[#allocation10 + $0x1f8] sm:$0xff]  ;;  %v3254_v40 = vpack.c.bf16 %v164_v31, %v160_v28  ;;  %v159_v42 = vld [vmem:[#allocation10 + $0x200] sm:$0xff] }
  0x71   :  { %1715 = vmatprep.subr.bf16.mxu0 %v3218_v57  ;;  %v163_v43 = vld [vmem:[#allocation10 + $0x220] sm:$0xff]  ;;  %v168_v46 = vld [vmem:[#allocation10 + $0x248] sm:$0xff]  ;;  %v3257_v48 = vpack.c.bf16 %v149_v35, %v145_v34  ;;  %v3260_v50 = vpack.c.bf16 %v158_v38, %v154_v37  ;;  %v153_v52 = vld [vmem:[#allocation10 + $0x1d0] sm:$0xff] }
  0x72   :  { %1777 = vmatpush1.bf16.msra.mxu1 %v3233_v12  ;;  %v172_v49 = vld [vmem:[#allocation10 + $0x268] sm:$0xff]  ;;  %v157_v53 = vld [vmem:[#allocation10 + $0x1f0] sm:$0xff]  ;;  %v162_v55 = vld [vmem:[#allocation10 + $0x218] sm:$0xff]  ;;  %v3263_v58 = vpack.c.bf16 %v163_v43, %v159_v42 }
  0x73   :  { %1779 = vmatprep.subr.bf16.mxu1 %v3236_v15  ;;  %v166_v56 = vld [vmem:[#allocation10 + $0x238] sm:$0xff]  ;;  %v3266_v59 = vpack.c.bf16 %v172_v49, %v168_v46  ;;  %v167_v60 = vld [vmem:[#allocation10 + $0x240] sm:$0xff]  ;;  %v176_v0 = vld [vmem:[#allocation10 + $0x288] sm:$0xff]  ;;  %v3269_v1 = vpack.c.bf16 %v157_v53, %v153_v52 }
  0x74   :  { %1717 = vmatpush1.bf16.msra.mxu0 %v3227_v5  ;;  %v171_v62 = vld [vmem:[#allocation10 + $0x260] sm:$0xff]  ;;  %v180_v2 = vld [vmem:[#allocation10 + $0x2a8] sm:$0xff]  ;;  %v3272_v4 = vpack.c.bf16 %v166_v56, %v162_v55  ;;  %v161_v9 = vld [vmem:[#allocation10 + $0x210] sm:$0xff] }
  0x75   :  { %1719 = vmatprep.subr.bf16.mxu0 %v3230_v6  ;;  %v165_v10 = vld [vmem:[#allocation10 + $0x230] sm:$0xff]  ;;  %v170_v11 = vld [vmem:[#allocation10 + $0x258] sm:$0xff]  ;;  %v3275_v17 = vpack.c.bf16 %v171_v62, %v167_v60  ;;  %v175_v18 = vld [vmem:[#allocation10 + $0x280] sm:$0xff]  ;;  %v3278_v19 = vpack.c.bf16 %v180_v2, %v176_v0 }
  0x76   :  { %1781 = vmatpush1.bf16.msra.mxu1 %v3245_v30  ;;  %v174_v14 = vld [vmem:[#allocation10 + $0x278] sm:$0xff]  ;;  %v179_v20 = vld [vmem:[#allocation10 + $0x2a0] sm:$0xff]  ;;  %v184_v26 = vld [vmem:[#allocation10 + $0x2c8] sm:$0xff]  ;;  %v3281_v28 = vpack.c.bf16 %v165_v10, %v161_v9 }
  0x77   :  { %1783 = vmatprep.subr.bf16.mxu1 %v3248_v33  ;;  %v188_v27 = vld [vmem:[#allocation10 + $0x2e8] sm:$0xff]  ;;  %v3284_v31 = vpack.c.bf16 %v174_v14, %v170_v11  ;;  %v169_v34 = vld [vmem:[#allocation10 + $0x250] sm:$0xff]  ;;  %v178_v38 = vld [vmem:[#allocation10 + $0x298] sm:$0xff]  ;;  %v3287_v43 = vpack.c.bf16 %v179_v20, %v175_v18 }
  0x78   :  { %1721 = vmatpush1.bf16.msra.mxu0 %v3239_v22  ;;  %v173_v35 = vld [vmem:[#allocation10 + $0x270] sm:$0xff]  ;;  %v182_v42 = vld [vmem:[#allocation10 + $0x2b8] sm:$0xff]  ;;  %v3290_v46 = vpack.c.bf16 %v188_v27, %v184_v26  ;;  %v183_v49 = vld [vmem:[#allocation10 + $0x2c0] sm:$0xff] }
  0x79   :  { %1723 = vmatprep.subr.bf16.mxu0 %v3242_v23  ;;  %v91_v37 = vld [vmem:[#allocation7] sm:$0xff]  ;;  %v187_v52 = vld [vmem:[#allocation10 + $0x2e0] sm:$0xff]  ;;  %v192_v53 = vld [vmem:[#allocation10 + $0x308] sm:$0xff]  ;;  %v3293_v55 = vpack.c.bf16 %v173_v35, %v169_v34  ;;  %v3296_v60 = vpack.c.bf16 %v182_v42, %v178_v38 }
  0x7a   :  { %1785 = vmatpush1.bf16.msra.mxu1 %v3257_v48  ;;  %293 = vmatprep.mubr.f32.mxu0 %v91_v37  ;;  %v196_v56 = vld [vmem:[#allocation10 + $0x328] sm:$0xff]  ;;  %v177_v62 = vld [vmem:[#allocation10 + $0x290] sm:$0xff]  ;;  %v186_v2 = vld [vmem:[#allocation10 + $0x2d8] sm:$0xff]  ;;  %v3299_v10 = vpack.c.bf16 %v187_v52, %v183_v49 }
  0x7b   :  { %1787 = vmatprep.subr.bf16.mxu1 %v3260_v50  ;;  %364 = vmatprep.mubr.f32.mxu1 %v91_v37  ;;  %4003 = vst [vmem:[#allocation24_spill] sm:$0xff] %v3296_v60  ;;  %v181_v0 = vld [vmem:[#allocation10 + $0x2b0] sm:$0xff]  ;;  %v190_v9 = vld [vmem:[#allocation10 + $0x2f8] sm:$0xff]  ;;  %v3302_v11 = vpack.c.bf16 %v196_v56, %v192_v53  ;;  %v191_v14 = vld [vmem:[#allocation10 + $0x300] sm:$0xff] }
  0x7c   :  { %1725 = vmatpush1.bf16.msra.mxu0 %v3251_v39  ;;  %4004 = vst [vmem:[#allocation25_spill] sm:$0xff] %v3299_v10  ;;  %v195_v18 = vld [vmem:[#allocation10 + $0x320] sm:$0xff]  ;;  %v200_v20 = vld [vmem:[#allocation10 + $0x348] sm:$0xff]  ;;  %v3305_v26 = vpack.c.bf16 %v181_v0, %v177_v62  ;;  %v3308_v34 = vpack.c.bf16 %v190_v9, %v186_v2  ;;  %v185_v35 = vld [vmem:[#allocation10 + $0x2d0] sm:$0xff] }
  0x7d   :  { %1727 = vmatprep.subr.bf16.mxu0 %v3254_v40  ;;  %4005 = vst [vmem:[#allocation26_spill] sm:$0xff] %v3302_v11  ;;  %v204_v27 = vld [vmem:[#allocation10 + $0x368] sm:$0xff]  ;;  %v189_v37 = vld [vmem:[#allocation10 + $0x2f0] sm:$0xff]  ;;  %v194_v38 = vld [vmem:[#allocation10 + $0x318] sm:$0xff]  ;;  %v3311_v49 = vpack.c.bf16 %v195_v18, %v191_v14 }
  0x7e   :  { %1789 = vmatpush1.bf16.msra.mxu1 %v3269_v1  ;;  %4006 = vst [vmem:[#allocation27_spill] sm:$0xff] %v3305_v26  ;;  %4007 = vst [vmem:[#allocation28_spill] sm:$0xff] %v3308_v34  ;;  %v198_v42 = vld [vmem:[#allocation10 + $0x338] sm:$0xff]  ;;  %v3314_v52 = vpack.c.bf16 %v204_v27, %v200_v20  ;;  %v199_v53 = vld [vmem:[#allocation10 + $0x340] sm:$0xff]  ;;  %v3317_v0 = vpack.c.bf16 %v189_v37, %v185_v35 }
  0x7f   :  { %1791 = vmatprep.subr.bf16.mxu1 %v3272_v4  ;;  %4008 = vst [vmem:[#allocation29_spill] sm:$0xff] %v3311_v49  ;;  %v203_v56 = vld [vmem:[#allocation10 + $0x360] sm:$0xff]  ;;  %v208_v62 = vld [vmem:[#allocation10 + $0x388] sm:$0xff]  ;;  %v3320_v9 = vpack.c.bf16 %v198_v42, %v194_v38  ;;  %v202_v14 = vld [vmem:[#allocation10 + $0x358] sm:$0xff] }
  0x80   :  { %1729 = vmatpush1.bf16.msra.mxu0 %v3263_v58  ;;  %4009 = vst [vmem:[#allocation30_spill] sm:$0xff] %v3314_v52  ;;  %4010 = vst [vmem:[#allocation31_spill] sm:$0xff] %v3317_v0  ;;  %v212_v2 = vld [vmem:[#allocation10 + $0x3a8] sm:$0xff]  ;;  %v206_v18 = vld [vmem:[#allocation10 + $0x378] sm:$0xff]  ;;  %v3323_v20 = vpack.c.bf16 %v203_v56, %v199_v53 }
  0x81   :  { %1731 = vmatprep.subr.bf16.mxu0 %v3266_v59  ;;  %4011 = vst [vmem:[#allocation32_spill] sm:$0xff] %v3320_v9  ;;  %v3326_v27 = vpack.c.bf16 %v212_v2, %v208_v62  ;;  %v211_v35 = vld [vmem:[#allocation10 + $0x3a0] sm:$0xff]  ;;  %v216_v37 = vld [vmem:[#allocation10 + $0x3c8] sm:$0xff]  ;;  %v3332_v42 = vpack.c.bf16 %v206_v18, %v202_v14  ;;  %v210_v53 = vld [vmem:[#allocation10 + $0x398] sm:$0xff] }
  0x82   :  { %1793 = vmatpush1.bf16.msra.mxu1 %v3281_v28  ;;  %4012 = vst [vmem:[#allocation33_spill] sm:$0xff] %v3323_v20  ;;  %v220_v38 = vld [vmem:[#allocation10 + $0x3e8] sm:$0xff]  ;;  %v214_v56 = vld [vmem:[#allocation10 + $0x3b8] sm:$0xff]  ;;  %v209_v18 = vld [vmem:[#allocation10 + $0x390] sm:$0xff] }
  0x83   :  { %1795 = vmatprep.subr.bf16.mxu1 %v3284_v31  ;;  %4013 = vst [vmem:[#allocation34_spill] sm:$0xff] %v3326_v27  ;;  %4015 = vst [vmem:[#allocation36_spill] sm:$0xff] %v3332_v42  ;;  %v3338_v2 = vpack.c.bf16 %v220_v38, %v216_v37  ;;  %v3344_v14 = vpack.c.bf16 %v214_v56, %v210_v53  ;;  %v221_v37 = vld [vmem:[#allocation10 + $0x3f0] sm:$0xff] }
  0x84   :  { %1733 = vmatpush1.bf16.msra.mxu0 %v3275_v17  ;;  %v227_v38 = vld [vmem:[#allocation4] sm:$0xff] }
  0x85   :  { %1735 = vmatprep.subr.bf16.mxu0 %v3278_v19  ;;  %4017 = vst [vmem:[#allocation38_spill] sm:$0xff] %v3338_v2  ;;  %4019 = vst [vmem:[#allocation40_spill] sm:$0xff] %v3344_v14  ;;  %v4028_v56 = vld [vmem:[#allocation28_spill] sm:$0xff] }
  0x86   :  { %1797 = vmatpush1.bf16.msra.mxu1 %v3293_v55 }
  0x87   :  { %1799 = vmatprep.subr.bf16.mxu1 %v3296_v60  ;;  %v193_v60 = vld [vmem:[#allocation10 + $0x310] sm:$0xff] }
  0x88   :  { %1737 = vmatpush1.bf16.msra.mxu0 %v3287_v43 }
  0x89   :  { %1739 = vmatprep.subr.bf16.mxu0 %v3290_v46 }
  0x8a   :  { %1801 = vmatpush1.bf16.msra.mxu1 %v3305_v26  ;;  %v207_v26 = vld [vmem:[#allocation10 + $0x380] sm:$0xff] }
  0x8b   :  { %1803 = vmatprep.subr.bf16.mxu1 %v3308_v34  ;;  %v3335_v62 = vpack.c.bf16 %v211_v35, %v207_v26 }
  0x8c   :  { %1741 = vmatpush1.bf16.msra.mxu0 %v3299_v10  ;;  %v197_v10 = vld [vmem:[#allocation10 + $0x330] sm:$0xff] }
  0x8d   :  { %1743 = vmatprep.subr.bf16.mxu0 %v3302_v11  ;;  %v3329_v34 = vpack.c.bf16 %v197_v10, %v193_v60  ;;  %v201_v11 = vld [vmem:[#allocation10 + $0x350] sm:$0xff]  ;;  %4016 = vst [vmem:[#allocation37_spill] sm:$0xff] %v3335_v62  ;;  %v219_v60 = vld [vmem:[#allocation10 + $0x3e0] sm:$0xff] }
  0x8e   :  { %1805 = vmatpush1.bf16.msra.mxu1 %v3317_v0  ;;  %v215_v0 = vld [vmem:[#allocation10 + $0x3c0] sm:$0xff] }
  0x8f   :  { %4014 = vst [vmem:[#allocation35_spill] sm:$0xff] %v3329_v34  ;;  %1807 = vmatprep.subr.bf16.mxu1 %v3320_v9  ;;  %v213_v9 = vld [vmem:[#allocation10 + $0x3b0] sm:$0xff]  ;;  %v3347_v26 = vpack.c.bf16 %v219_v60, %v215_v0  ;;  %v4025_v0 = vld [vmem:[#allocation25_spill] sm:$0xff] }
  0x90   :  { %1745 = vmatpush1.bf16.msra.mxu0 %v3311_v49  ;;  %v205_v49 = vld [vmem:[#allocation10 + $0x370] sm:$0xff]  ;;  %v3351_v35 = vpack.c.bf16 %v213_v9, %v209_v18  ;;  %v4029_v60 = vld [vmem:[#allocation29_spill] sm:$0xff] }
  0x91   :  { %1747 = vmatprep.subr.bf16.mxu0 %v3314_v52  ;;  %v3341_v10 = vpack.c.bf16 %v205_v49, %v201_v11  ;;  %v218_v52 = vld [vmem:[#allocation10 + $0x3d8] sm:$0xff]  ;;  %4020 = vst [vmem:[#allocation41_spill] sm:$0xff] %v3347_v26  ;;  %v217_v49 = vld [vmem:[#allocation10 + $0x3d0] sm:$0xff] }
  0x92   :  { %1809 = vmatpush1.bf16.msra.mxu1 %v3329_v34  ;;  %4021 = vst [vmem:[#allocation42_spill] sm:$0xff] %v3351_v35  ;;  %v3358_v53 = vpack.c.bf16 %v221_v37, %v217_v49  ;;  %v4026_v9 = vld [vmem:[#allocation26_spill] sm:$0xff]  ;;  %v4031_v49 = vld [vmem:[#allocation31_spill] sm:$0xff]  ;;  %v4032_v37 = vld [vmem:[#allocation32_spill] sm:$0xff] }
  0x93   :  { %4018 = vst [vmem:[#allocation39_spill] sm:$0xff] %v3341_v10  ;;  %1811 = vmatprep.subr.bf16.mxu1 %v3332_v42  ;;  %v4030_v18 = vld [vmem:[#allocation30_spill] sm:$0xff] }
  0x94   :  { %1749 = vmatpush1.bf16.msra.mxu0 %v3323_v20  ;;  %v222_v20 = vld [vmem:[#allocation10 + $0x3f8] sm:$0xff]  ;;  %4023 = vst [vmem:[#allocation44_spill] sm:$0xff] %v3358_v53 }
  0x95   :  { %1751 = vmatprep.subr.bf16.mxu0 %v3326_v27  ;;  %v3354_v11 = vpack.c.bf16 %v222_v20, %v218_v52  ;;  %v4024_v52 = vld [vmem:[#allocation24_spill] sm:$0xff]  ;;  %v4027_v20 = vld [vmem:[#allocation27_spill] sm:$0xff] }
  0x96   :  { %1813 = vmatpush1.bf16.msra.mxu1 %v3341_v10 }
  0x97   :  { %1815 = vmatprep.subr.bf16.mxu1 %v3344_v14  ;;  %4022 = vst [vmem:[#allocation43_spill] sm:$0xff] %v3354_v11 }
  0x98   :  { %1753 = vmatpush1.bf16.msra.mxu0 %v3335_v62 }
  0x99   :  { %1755 = vmatprep.subr.bf16.mxu0 %v3338_v2 }
  0x9a   :  { %1817 = vmatpush1.bf16.msra.mxu1 %v3351_v35 }
  0x9b   :  { %1819 = vmatprep.subr.bf16.mxu1 %v3354_v11 }
  0x9c   :  { %1757 = vmatpush1.bf16.msra.mxu0 %v3347_v26 }
  0x9d   :  { %1823 = vmatprep.subr.bf16.mxu0 %v3170_v3 }
  0x9e   :  { %1821 = vmatpush1.bf16.msra.mxu1 %v3358_v53 }
  0x9f   :  { %294 = vmatmul.mubr.f32.vlgmr.msra.gmra.mrb[0].mxu0 %v227_v38  ;;  %1887 = vmatprep.subr.bf16.mxu1 %v3183_v21 }
  0xa0   :  { %1825 = vmatpush1.bf16.msra.mxu0 %v3172_v7 }
  0xa1   :  { %1827 = vmatprep.subr.bf16.mxu0 %v3174_v8  ;;  %365 = vmatmul.mubr.f32.vlgmr.msra.gmra.mrb[0].mxu1 %v227_v38  ;;  %v4033_v38 = vld [vmem:[#allocation33_spill] sm:$0xff] }
  0xa2   :  { %1889 = vmatpush1.bf16.msra.mxu1 %v3185_v24 }
  0xa3   :  { %1891 = vmatprep.subr.bf16.mxu1 %v3195_v32 }
  0xa4   :  { %1829 = vmatpush1.bf16.msra.mxu0 %v3178_v13 }
  0xa5   :  { %1831 = vmatprep.subr.bf16.mxu0 %v3181_v16 }
  0xa6   :  { %1893 = vmatpush1.bf16.msra.mxu1 %v3197_v36 }
  0xa7   :  { %1895 = vmatprep.subr.bf16.mxu1 %v3203_v44 }
  0xa8   :  { %1833 = vmatpush1.bf16.msra.mxu0 %v3188_v25 }
  0xa9   :  { %1835 = vmatprep.subr.bf16.mxu0 %v3192_v29 }
  0xaa   :  { %1897 = vmatpush1.bf16.msra.mxu1 %v3209_v47 }
  0xab   :  { %1899 = vmatprep.subr.bf16.mxu1 %v3212_v51 }
  0xac   :  { %1837 = vmatpush1.bf16.msra.mxu0 %v3201_v41 }
  0xad   :  { %1839 = vmatprep.subr.bf16.mxu0 %v3206_v45 }
  0xae   :  { %1901 = vmatpush1.bf16.msra.mxu1 %v3221_v61 }
  0xaf   :  { %1903 = vmatprep.subr.bf16.mxu1 %v3224_v63 }
  0xb0   :  { %1841 = vmatpush1.bf16.msra.mxu0 %v3215_v54 }
  0xb1   :  { %1843 = vmatprep.subr.bf16.mxu0 %v3218_v57 }
  0xb2   :  { %1905 = vmatpush1.bf16.msra.mxu1 %v3233_v12 }
  0xb3   :  { %1907 = vmatprep.subr.bf16.mxu1 %v3236_v15 }
  0xb4   :  { %1845 = vmatpush1.bf16.msra.mxu0 %v3227_v5 }
  0xb5   :  { %1847 = vmatprep.subr.bf16.mxu0 %v3230_v6 }
  0xb6   :  { %1909 = vmatpush1.bf16.msra.mxu1 %v3245_v30 }
  0xb7   :  { %1911 = vmatprep.subr.bf16.mxu1 %v3248_v33 }
  0xb8   :  { %1849 = vmatpush1.bf16.msra.mxu0 %v3239_v22 }
  0xb9   :  { %1851 = vmatprep.subr.bf16.mxu0 %v3242_v23 }
  0xba   :  { %1913 = vmatpush1.bf16.msra.mxu1 %v3257_v48 }
  0xbb   :  { %1915 = vmatprep.subr.bf16.mxu1 %v3260_v50 }
  0xbc   :  { %1853 = vmatpush1.bf16.msra.mxu0 %v3251_v39 }
  0xbd   :  { %1855 = vmatprep.subr.bf16.mxu0 %v3254_v40 }
  0xbe   :  { %1917 = vmatpush1.bf16.msra.mxu1 %v3269_v1 }
  0xbf   :  { %1919 = vmatprep.subr.bf16.mxu1 %v3272_v4 }
  0xc0   :  { %1857 = vmatpush1.bf16.msra.mxu0 %v3263_v58 }
  0xc1   :  { %1859 = vmatprep.subr.bf16.mxu0 %v3266_v59 }
  0xc2   :  { %1921 = vmatpush1.bf16.msra.mxu1 %v3281_v28 }
  0xc3   :  { %1923 = vmatprep.subr.bf16.mxu1 %v3284_v31 }
  0xc4   :  { %1861 = vmatpush1.bf16.msra.mxu0 %v3275_v17 }
  0xc5   :  { %1863 = vmatprep.subr.bf16.mxu0 %v3278_v19 }
  0xc6   :  { %1925 = vmatpush1.bf16.msra.mxu1 %v3293_v55 }
  0xc7   :  { %1927 = vmatprep.subr.bf16.mxu1 %v4024_v52 }
  0xc8   :  { %1865 = vmatpush1.bf16.msra.mxu0 %v3287_v43 }
  0xc9   :  { %1867 = vmatprep.subr.bf16.mxu0 %v3290_v46 }
  0xca   :  { %1929 = vmatpush1.bf16.msra.mxu1 %v4027_v20 }
  0xcb   :  { %1931 = vmatprep.subr.bf16.mxu1 %v4028_v56 }
  0xcc   :  { %1869 = vmatpush1.bf16.msra.mxu0 %v4025_v0 }
  0xcd   :  { %1871 = vmatprep.subr.bf16.mxu0 %v4026_v9 }
  0xce   :  { %1933 = vmatpush1.bf16.msra.mxu1 %v4031_v49 }
  0xcf   :  { %1935 = vmatprep.subr.bf16.mxu1 %v4032_v37 }
  0xd0   :  { %1873 = vmatpush1.bf16.msra.mxu0 %v4029_v60 }
  0xd1   :  { %1875 = vmatprep.subr.bf16.mxu0 %v4030_v18 }
  0xd2   :  { %1937 = vmatpush1.bf16.msra.mxu1 %v3329_v34 }
  0xd3   :  { %1939 = vmatprep.subr.bf16.mxu1 %v3332_v42  ;;  %v3434_v42 = vld [vmem:[#allocation12 + $0x18] sm:$0xff] }
  0xd4   :  { %1877 = vmatpush1.bf16.msra.mxu0 %v4033_v38  ;;  %4036 = vst [vmem:[#allocation28_spill] sm:$0xff] %v3434_v42 }
  0xd5   :  { %1879 = vmatprep.subr.bf16.mxu0 %v3326_v27  ;;  %v3428_v27 = vld [vmem:[#allocation12] sm:$0xff] }
  0xd6   :  { %1941 = vmatpush1.bf16.msra.mxu1 %v3341_v10  ;;  %4034 = vst [vmem:[#allocation24_spill] sm:$0xff] %v3428_v27 }
  0xd7   :  { %1943 = vmatprep.subr.bf16.mxu1 %v3344_v14 }
  0xd8   :  { %1881 = vmatpush1.bf16.msra.mxu0 %v3335_v62  ;;  %v3430_v62 = vld [vmem:[#allocation12 + $0x8] sm:$0xff] }
  0xd9   :  { %1883 = vmatprep.subr.bf16.mxu0 %v3338_v2  ;;  %4035 = vst [vmem:[#allocation27_spill] sm:$0xff] %v3430_v62 }
  0xda   :  { %1945 = vmatpush1.bf16.msra.mxu1 %v3351_v35 }
  0xdb   :  { %1947 = vmatprep.subr.bf16.mxu1 %v3354_v11  ;;  %v3437_v11 = vld [vmem:[#allocation12 + $0x10] sm:$0xff] }
  0xdc   :  { %1885 = vmatpush1.bf16.msra.mxu0 %v3347_v26 }
  0xdd   :  { %1951 = vmatprep.subr.bf16.mxu0 %v3170_v3 }
  0xde   :  { %1949 = vmatpush1.bf16.msra.mxu1 %v3358_v53 }
  0xdf   :  { %2015 = vmatprep.subr.bf16.mxu1 %v3183_v21 }
 0x172   :  { %v295_v2 = vpop.f32.mrb[0].mxu0 }
 0x173   :  { %v296_v10 = vadd.f32 %v295_v2, %v3428_v27  ;;  %v297_v14 = vpop.f32.mrb[1].mxu0 }
 0x174   :  { %v298_v26 = vadd.f32 %v297_v14, %v3430_v62  ;;  %v366_v3 = vpop.f32.mrb[0].mxu1 }
 0x175   :  { %v1670_v38 = vmul.f32 -1.442695, %v296_v10  ;;  %v368_v53 = vpop.f32.mrb[1].mxu1  ;;  %v367_v34 = vadd.f32 %v366_v3, %v3437_v11 }
 0x176   :  { %v1671_v35 = vmul.f32 -1.442695, %v298_v26  ;;  %v369_v21 = vadd.f32 %v368_v53, %v3434_v42 }
 0x177   :  { %2730 = vpow2.f32 %v1670_v38  ;;  %v93_v38 = vld [vmem:[#allocation9] sm:$0xff] }
 0x178   :  { %2732 = vpow2.f32 %v1671_v35  ;;  %v1672_v18 = vmul.f32 -1.442695, %v369_v21 }
 0x17a   :  { %2734 = vpow2.f32 %v1672_v18  ;;  %v4040_v18 = vld [vmem:[#allocation35_spill] sm:$0xff] }
 0x17b   :  { %2736 = vtanh.f32 %v367_v34  ;;  %v400_v34 = vld [vmem:[#allocation4 + $0x8] sm:$0xff] }
 0x181   :  { %v2731_v60 = vpop.eup %2730 }
 0x182   :  { %v2733_v2 = vpop.eup %2732  ;;  %v374_v27 = vadd.f32 1.0, %v2731_v60 }
 0x183   :  { %v380_v10 = vadd.f32 1.0, %v2733_v2  ;;  %v4042_v2 = vld [vmem:[#allocation36_spill] sm:$0xff] }
 0x184   :  { %2738 = vrcp.f32 %v374_v27  ;;  %v2735_v14 = vpop.eup %2734  ;;  %v4037_v27 = vld [vmem:[#allocation26_spill] sm:$0xff] }
 0x185   :  { %2740 = vrcp.f32 %v380_v10  ;;  %v2737_v26 = vpop.eup %2736  ;;  %v387_v62 = vadd.f32 1.0, %v2735_v14  ;;  %v4043_v10 = vld [vmem:[#allocation33_spill] sm:$0xff]  ;;  %v4044_v14 = vld [vmem:[#allocation39_spill] sm:$0xff] }
 0x187   :  { %2742 = vrcp.f32 %v387_v62  ;;  %v4039_v62 = vld [vmem:[#allocation29_spill] sm:$0xff] }
 0x18e   :  { %v2739_v35 = vpop.eup %2738 }
 0x18f   :  { %v2741_v37 = vpop.eup %2740  ;;  %v392_v53 = vmul.f32 %v2739_v35, %v2737_v26  ;;  %v4045_v26 = vld [vmem:[#allocation34_spill] sm:$0xff]  ;;  %v4047_v35 = vld [vmem:[#allocation37_spill] sm:$0xff] }
 0x190   :  { %v391_v42 = vmul.f32 %v2741_v37, %v93_v38  ;;  %v4041_v37 = vld [vmem:[#allocation30_spill] sm:$0xff]  ;;  %v4046_v38 = vld [vmem:[#allocation40_spill] sm:$0xff] }
 0x191   :  { %v2743_v3 = vpop.eup %2742 }
 0x192   :  { %v3440_v9 = vadd.f32 %v392_v53, %v391_v42  ;;  %v4038_v42 = vld [vmem:[#allocation32_spill] sm:$0xff]  ;;  %v4048_v53 = vld [vmem:[#allocation42_spill] sm:$0xff] }
 0x194   :  { %2744 = vtanh.f32 %v3440_v9 }
 0x19e   :  { %v2745_v21 = vpop.eup %2744 }
 0x19f   :  { %v395_v60 = vmul.f32 %v2745_v21, %v2743_v3  ;;  %v4049_v3 = vld [vmem:[#allocation38_spill] sm:$0xff]  ;;  %v4050_v21 = vld [vmem:[#allocation43_spill] sm:$0xff] }
 0x1a1   :  { %398 = vst [vmem:[#allocation13] sm:$0xff] %v395_v60  ;;  %466 = vmatprep.mubr.f32.mxu0 %v395_v60  ;;  %537 = vmatprep.mubr.f32.mxu1 %v395_v60  ;;  %v4051_v60 = vld [vmem:[#allocation41_spill] sm:$0xff] }
 0x1a2   :  { %467 = vmatmul.mubr.f32.vlgmr.msra.gmra.mrb[2].mxu0 %v400_v34  ;;  %538 = vmatmul.mubr.f32.vlgmr.msra.gmra.mrb[2].mxu1 %v400_v34  ;;  %v4052_v34 = vld [vmem:[#allocation44_spill] sm:$0xff] }
 0x1a3   :  { %1953 = vmatpush1.bf16.msra.mxu0 %v3172_v7  ;;  %2017 = vmatpush1.bf16.msra.mxu1 %v3185_v24 }
 0x1a4   :  { %1955 = vmatprep.subr.bf16.mxu0 %v3174_v8  ;;  %2019 = vmatprep.subr.bf16.mxu1 %v3195_v32 }
 0x1a7   :  { %1957 = vmatpush1.bf16.msra.mxu0 %v3178_v13  ;;  %2021 = vmatpush1.bf16.msra.mxu1 %v3197_v36 }
 0x1a8   :  { %1959 = vmatprep.subr.bf16.mxu0 %v3181_v16  ;;  %2023 = vmatprep.subr.bf16.mxu1 %v3203_v44 }
 0x1ab   :  { %1961 = vmatpush1.bf16.msra.mxu0 %v3188_v25  ;;  %2025 = vmatpush1.bf16.msra.mxu1 %v3209_v47 }
 0x1ac   :  { %1963 = vmatprep.subr.bf16.mxu0 %v3192_v29  ;;  %2027 = vmatprep.subr.bf16.mxu1 %v3212_v51 }
 0x1af   :  { %1965 = vmatpush1.bf16.msra.mxu0 %v3201_v41  ;;  %2029 = vmatpush1.bf16.msra.mxu1 %v3221_v61 }
 0x1b0   :  { %1967 = vmatprep.subr.bf16.mxu0 %v3206_v45  ;;  %2031 = vmatprep.subr.bf16.mxu1 %v3224_v63 }
 0x1b3   :  { %1969 = vmatpush1.bf16.msra.mxu0 %v3215_v54  ;;  %2033 = vmatpush1.bf16.msra.mxu1 %v3233_v12 }
 0x1b4   :  { %1971 = vmatprep.subr.bf16.mxu0 %v3218_v57  ;;  %2035 = vmatprep.subr.bf16.mxu1 %v3236_v15 }
 0x1b7   :  { %1973 = vmatpush1.bf16.msra.mxu0 %v3227_v5  ;;  %2037 = vmatpush1.bf16.msra.mxu1 %v3245_v30 }
 0x1b8   :  { %1975 = vmatprep.subr.bf16.mxu0 %v3230_v6  ;;  %2039 = vmatprep.subr.bf16.mxu1 %v3248_v33 }
 0x1bb   :  { %1977 = vmatpush1.bf16.msra.mxu0 %v3239_v22  ;;  %2041 = vmatpush1.bf16.msra.mxu1 %v3257_v48 }
 0x1bc   :  { %1979 = vmatprep.subr.bf16.mxu0 %v3242_v23  ;;  %2043 = vmatprep.subr.bf16.mxu1 %v3260_v50 }
 0x1bf   :  { %1981 = vmatpush1.bf16.msra.mxu0 %v3251_v39  ;;  %2045 = vmatpush1.bf16.msra.mxu1 %v3269_v1 }
 0x1c0   :  { %1983 = vmatprep.subr.bf16.mxu0 %v3254_v40  ;;  %2047 = vmatprep.subr.bf16.mxu1 %v3272_v4 }
 0x1c3   :  { %1985 = vmatpush1.bf16.msra.mxu0 %v3263_v58  ;;  %2049 = vmatpush1.bf16.msra.mxu1 %v3281_v28 }
 0x1c4   :  { %1987 = vmatprep.subr.bf16.mxu0 %v3266_v59  ;;  %2051 = vmatprep.subr.bf16.mxu1 %v3284_v31 }
 0x1c7   :  { %1989 = vmatpush1.bf16.msra.mxu0 %v3275_v17  ;;  %2053 = vmatpush1.bf16.msra.mxu1 %v3293_v55 }
 0x1c8   :  { %1991 = vmatprep.subr.bf16.mxu0 %v3278_v19  ;;  %2055 = vmatprep.subr.bf16.mxu1 %v4024_v52 }
 0x1cb   :  { %1993 = vmatpush1.bf16.msra.mxu0 %v3287_v43  ;;  %2057 = vmatpush1.bf16.msra.mxu1 %v4027_v20 }
 0x1cc   :  { %1995 = vmatprep.subr.bf16.mxu0 %v3290_v46  ;;  %2059 = vmatprep.subr.bf16.mxu1 %v4028_v56 }
 0x1cf   :  { %1997 = vmatpush1.bf16.msra.mxu0 %v4025_v0  ;;  %2061 = vmatpush1.bf16.msra.mxu1 %v4031_v49 }
 0x1d0   :  { %1999 = vmatprep.subr.bf16.mxu0 %v4037_v27  ;;  %2063 = vmatprep.subr.bf16.mxu1 %v4038_v42 }
 0x1d3   :  { %2001 = vmatpush1.bf16.msra.mxu0 %v4039_v62  ;;  %2065 = vmatpush1.bf16.msra.mxu1 %v4040_v18  ;;  %v4056_v62 = vld [vmem:[#allocation27_spill] sm:$0xff] }
 0x1d4   :  { %2003 = vmatprep.subr.bf16.mxu0 %v4041_v37  ;;  %2067 = vmatprep.subr.bf16.mxu1 %v4042_v2  ;;  %v4053_v2 = vld [vmem:[#allocation22_spill] sm:$0xff]  ;;  %v4055_v37 = vld [vmem:[#allocation24_spill] sm:$0xff] }
 0x1d7   :  { %2005 = vmatpush1.bf16.msra.mxu0 %v4043_v10  ;;  %2069 = vmatpush1.bf16.msra.mxu1 %v4044_v14  ;;  %v4054_v10 = vld [vmem:[#allocation23_spill] sm:$0xff] }
 0x1d8   :  { %2007 = vmatprep.subr.bf16.mxu0 %v4045_v26  ;;  %2071 = vmatprep.subr.bf16.mxu1 %v4046_v38 }
 0x1db   :  { %2009 = vmatpush1.bf16.msra.mxu0 %v4047_v35  ;;  %2073 = vmatpush1.bf16.msra.mxu1 %v4048_v53 }
 0x1dc   :  { %2011 = vmatprep.subr.bf16.mxu0 %v4049_v3  ;;  %2075 = vmatprep.subr.bf16.mxu1 %v4050_v21  ;;  %v4057_v21 = vld [vmem:[#allocation28_spill] sm:$0xff] }
 0x1df   :  { %2013 = vmatpush1.bf16.msra.mxu0 %v4051_v60  ;;  %2077 = vmatpush1.bf16.msra.mxu1 %v4052_v34 }
 0x1e0   :  { %2079 = vmatprep.subr.bf16.mxu0 %v4053_v2  ;;  %2143 = vmatprep.subr.bf16.mxu1 %v4054_v10 }
 0x275   :  { %v468_v14 = vpop.f32.mrb[2].mxu0  ;;  %v539_v26 = vpop.f32.mrb[2].mxu1 }
 0x276   :  { %v469_v38 = vadd.f32 %v468_v14, %v4055_v37  ;;  %v470_v18 = vpop.f32.mrb[3].mxu0  ;;  %v541_v35 = vpop.f32.mrb[3].mxu1  ;;  %v540_v34 = vadd.f32 %v539_v26, %v3437_v11 }
 0x277   :  { %v471_v53 = vadd.f32 %v470_v18, %v4056_v62  ;;  %v542_v60 = vadd.f32 %v541_v35, %v4057_v21 }
 0x278   :  { %v1673_v42 = vmul.f32 -1.442695, %v469_v38 }
 0x279   :  { %v1674_v3 = vmul.f32 -1.442695, %v471_v53  ;;  %v1675_v27 = vmul.f32 -1.442695, %v542_v60  ;;  %v574_v60 = vld [vmem:[#allocation4 + $0x10] sm:$0xff] }
 0x27a   :  { %2746 = vpow2.f32 %v1673_v42 }
 0x27b   :  { %2748 = vpow2.f32 %v1674_v3 }
 0x27c   :  { %2750 = vpow2.f32 %v1675_v27 }
 0x27d   :  { %2752 = vtanh.f32 %v540_v34  ;;  %v4063_v34 = vld [vmem:[#allocation35_spill] sm:$0xff] }
 0x284   :  { %v2747_v2 = vpop.eup %2746 }
 0x285   :  { %v2749_v10 = vpop.eup %2748  ;;  %v547_v49 = vadd.f32 1.0, %v2747_v2 }
 0x286   :  { %v553_v0 = vadd.f32 1.0, %v2749_v10  ;;  %v2751_v14 = vpop.eup %2750  ;;  %v4062_v10 = vld [vmem:[#allocation29_spill] sm:$0xff] }
 0x287   :  { %2754 = vrcp.f32 %v547_v49  ;;  %v2753_v37 = vpop.eup %2752  ;;  %v560_v38 = vadd.f32 1.0, %v2751_v14  ;;  %v4060_v49 = vld [vmem:[#allocation26_spill] sm:$0xff] }
 0x288   :  { %2756 = vrcp.f32 %v553_v0  ;;  %v4058_v0 = vld [vmem:[#allocation25_spill] sm:$0xff]  ;;  %v4064_v14 = vld [vmem:[#allocation30_spill] sm:$0xff] }
 0x289   :  { %2758 = vrcp.f32 %v560_v38  ;;  %v4066_v38 = vld [vmem:[#allocation33_spill] sm:$0xff] }
 0x291   :  { %v2755_v18 = vpop.eup %2754 }
 0x292   :  { %v2757_v53 = vpop.eup %2756  ;;  %v565_v42 = vmul.f32 %v2755_v18, %v2753_v37  ;;  %v4061_v37 = vld [vmem:[#allocation32_spill] sm:$0xff] }
 0x293   :  { %v564_v3 = vmul.f32 %v2757_v53, %v3440_v9  ;;  %v2759_v27 = vpop.eup %2758  ;;  %v4059_v9 = vld [vmem:[#allocation31_spill] sm:$0xff]  ;;  %v4065_v18 = vld [vmem:[#allocation36_spill] sm:$0xff] }
 0x294   :  { %v4067_v53 = vld [vmem:[#allocation39_spill] sm:$0xff] }
 0x295   :  { %v3512_v35 = vadd.f32 %v565_v42, %v564_v3  ;;  %v4068_v42 = vld [vmem:[#allocation34_spill] sm:$0xff]  ;;  %v4069_v3 = vld [vmem:[#allocation40_spill] sm:$0xff] }
 0x297   :  { %2760 = vtanh.f32 %v3512_v35 }
 0x2a1   :  { %v2761_v26 = vpop.eup %2760 }
 0x2a2   :  { %v568_v2 = vmul.f32 %v2761_v26, %v2759_v27  ;;  %v4070_v27 = vld [vmem:[#allocation37_spill] sm:$0xff]  ;;  %v4071_v26 = vld [vmem:[#allocation42_spill] sm:$0xff] }
 0x2a4   :  { %572 = vst [vmem:[#allocation13 + $0x8] sm:$0xff] %v568_v2  ;;  %640 = vmatprep.mubr.f32.mxu0 %v568_v2  ;;  %711 = vmatprep.mubr.f32.mxu1 %v568_v2  ;;  %v4072_v2 = vld [vmem:[#allocation38_spill] sm:$0xff] }
 0x2a5   :  { %641 = vmatmul.mubr.f32.vlgmr.msra.gmra.mrb[4].mxu0 %v574_v60  ;;  %712 = vmatmul.mubr.f32.vlgmr.msra.gmra.mrb[4].mxu1 %v574_v60  ;;  %v4073_v60 = vld [vmem:[#allocation43_spill] sm:$0xff] }
 0x2a6   :  { %2081 = vmatpush1.bf16.msra.mxu0 %v3172_v7  ;;  %2145 = vmatpush1.bf16.msra.mxu1 %v3185_v24 }
 0x2a7   :  { %2083 = vmatprep.subr.bf16.mxu0 %v3174_v8  ;;  %2147 = vmatprep.subr.bf16.mxu1 %v3195_v32 }
 0x2aa   :  { %2085 = vmatpush1.bf16.msra.mxu0 %v3178_v13  ;;  %2149 = vmatpush1.bf16.msra.mxu1 %v3197_v36 }
 0x2ab   :  { %2087 = vmatprep.subr.bf16.mxu0 %v3181_v16  ;;  %2151 = vmatprep.subr.bf16.mxu1 %v3203_v44 }
 0x2ae   :  { %2089 = vmatpush1.bf16.msra.mxu0 %v3188_v25  ;;  %2153 = vmatpush1.bf16.msra.mxu1 %v3209_v47 }
 0x2af   :  { %2091 = vmatprep.subr.bf16.mxu0 %v3192_v29  ;;  %2155 = vmatprep.subr.bf16.mxu1 %v3212_v51 }
 0x2b2   :  { %2093 = vmatpush1.bf16.msra.mxu0 %v3201_v41  ;;  %2157 = vmatpush1.bf16.msra.mxu1 %v3221_v61 }
 0x2b3   :  { %2095 = vmatprep.subr.bf16.mxu0 %v3206_v45  ;;  %2159 = vmatprep.subr.bf16.mxu1 %v3224_v63 }
 0x2b6   :  { %2097 = vmatpush1.bf16.msra.mxu0 %v3215_v54  ;;  %2161 = vmatpush1.bf16.msra.mxu1 %v3233_v12 }
 0x2b7   :  { %2099 = vmatprep.subr.bf16.mxu0 %v3218_v57  ;;  %2163 = vmatprep.subr.bf16.mxu1 %v3236_v15 }
 0x2ba   :  { %2101 = vmatpush1.bf16.msra.mxu0 %v3227_v5  ;;  %2165 = vmatpush1.bf16.msra.mxu1 %v3245_v30 }
 0x2bb   :  { %2103 = vmatprep.subr.bf16.mxu0 %v3230_v6  ;;  %2167 = vmatprep.subr.bf16.mxu1 %v3248_v33 }
 0x2be   :  { %2105 = vmatpush1.bf16.msra.mxu0 %v3239_v22  ;;  %2169 = vmatpush1.bf16.msra.mxu1 %v3257_v48 }
 0x2bf   :  { %2107 = vmatprep.subr.bf16.mxu0 %v3242_v23  ;;  %2171 = vmatprep.subr.bf16.mxu1 %v3260_v50 }
 0x2c2   :  { %2109 = vmatpush1.bf16.msra.mxu0 %v3251_v39  ;;  %2173 = vmatpush1.bf16.msra.mxu1 %v3269_v1 }
 0x2c3   :  { %2111 = vmatprep.subr.bf16.mxu0 %v3254_v40  ;;  %2175 = vmatprep.subr.bf16.mxu1 %v3272_v4 }
 0x2c6   :  { %2113 = vmatpush1.bf16.msra.mxu0 %v3263_v58  ;;  %2177 = vmatpush1.bf16.msra.mxu1 %v3281_v28 }
 0x2c7   :  { %2115 = vmatprep.subr.bf16.mxu0 %v3266_v59  ;;  %2179 = vmatprep.subr.bf16.mxu1 %v3284_v31 }
 0x2ca   :  { %2117 = vmatpush1.bf16.msra.mxu0 %v3275_v17  ;;  %2181 = vmatpush1.bf16.msra.mxu1 %v3293_v55 }
 0x2cb   :  { %2119 = vmatprep.subr.bf16.mxu0 %v3278_v19  ;;  %2183 = vmatprep.subr.bf16.mxu1 %v4024_v52 }
 0x2ce   :  { %2121 = vmatpush1.bf16.msra.mxu0 %v3287_v43  ;;  %2185 = vmatpush1.bf16.msra.mxu1 %v4027_v20 }
 0x2cf   :  { %2123 = vmatprep.subr.bf16.mxu0 %v3290_v46  ;;  %2187 = vmatprep.subr.bf16.mxu1 %v4028_v56 }
 0x2d2   :  { %2125 = vmatpush1.bf16.msra.mxu0 %v4058_v0  ;;  %2189 = vmatpush1.bf16.msra.mxu1 %v4059_v9 }
 0x2d3   :  { %2127 = vmatprep.subr.bf16.mxu0 %v4060_v49  ;;  %2191 = vmatprep.subr.bf16.mxu1 %v4061_v37 }
 0x2d6   :  { %2129 = vmatpush1.bf16.msra.mxu0 %v4062_v10  ;;  %2193 = vmatpush1.bf16.msra.mxu1 %v4063_v34  ;;  %v4074_v34 = vld [vmem:[#allocation41_spill] sm:$0xff]  ;;  %v4078_v10 = vld [vmem:[#allocation24_spill] sm:$0xff] }
 0x2d7   :  { %2131 = vmatprep.subr.bf16.mxu0 %v4064_v14  ;;  %2195 = vmatprep.subr.bf16.mxu1 %v4065_v18  ;;  %v4075_v14 = vld [vmem:[#allocation44_spill] sm:$0xff]  ;;  %v4076_v18 = vld [vmem:[#allocation22_spill] sm:$0xff] }
 0x2da   :  { %2133 = vmatpush1.bf16.msra.mxu0 %v4066_v38  ;;  %2197 = vmatpush1.bf16.msra.mxu1 %v4067_v53  ;;  %v4077_v38 = vld [vmem:[#allocation23_spill] sm:$0xff] }
 0x2db   :  { %2135 = vmatprep.subr.bf16.mxu0 %v4068_v42  ;;  %2199 = vmatprep.subr.bf16.mxu1 %v4069_v3 }
 0x2de   :  { %2137 = vmatpush1.bf16.msra.mxu0 %v4070_v27  ;;  %2201 = vmatpush1.bf16.msra.mxu1 %v4071_v26 }
 0x2df   :  { %2139 = vmatprep.subr.bf16.mxu0 %v4072_v2  ;;  %2203 = vmatprep.subr.bf16.mxu1 %v4073_v60 }
 0x2e2   :  { %2141 = vmatpush1.bf16.msra.mxu0 %v4074_v34  ;;  %2205 = vmatpush1.bf16.msra.mxu1 %v4075_v14 }
 0x2e3   :  { %2207 = vmatprep.subr.bf16.mxu0 %v4076_v18  ;;  %2271 = vmatprep.subr.bf16.mxu1 %v4077_v38 }
 0x378   :  { %v642_v53 = vpop.f32.mrb[4].mxu0  ;;  %v713_v42 = vpop.f32.mrb[4].mxu1 }
 0x379   :  { %v643_v3 = vadd.f32 %v642_v53, %v4078_v10  ;;  %v644_v37 = vpop.f32.mrb[5].mxu0  ;;  %v715_v27 = vpop.f32.mrb[5].mxu1  ;;  %v714_v14 = vadd.f32 %v713_v42, %v3437_v11 }
 0x37a   :  { %v645_v26 = vadd.f32 %v644_v37, %v4056_v62  ;;  %v716_v34 = vadd.f32 %v715_v27, %v4057_v21 }
 0x37b   :  { %v1676_v49 = vmul.f32 -1.442695, %v643_v3 }
 0x37c   :  { %v1677_v2 = vmul.f32 -1.442695, %v645_v26  ;;  %v1678_v60 = vmul.f32 -1.442695, %v716_v34 }
 0x37d   :  { %2762 = vpow2.f32 %v1676_v49 }
 0x37e   :  { %2764 = vpow2.f32 %v1677_v2 }
 0x37f   :  { %2766 = vpow2.f32 %v1678_v60  ;;  %v4084_v60 = vld [vmem:[#allocation35_spill] sm:$0xff] }
 0x380   :  { %2768 = vtanh.f32 %v714_v14  ;;  %v748_v14 = vld [vmem:[#allocation4 + $0x18] sm:$0xff] }
 0x387   :  { %v2763_v18 = vpop.eup %2762 }
 0x388   :  { %v2765_v38 = vpop.eup %2764  ;;  %v721_v9 = vadd.f32 1.0, %v2763_v18 }
 0x389   :  { %v727_v0 = vadd.f32 1.0, %v2765_v38  ;;  %v2767_v53 = vpop.eup %2766  ;;  %v4083_v38 = vld [vmem:[#allocation29_spill] sm:$0xff] }
 0x38a   :  { %2770 = vrcp.f32 %v721_v9  ;;  %v2769_v10 = vpop.eup %2768  ;;  %v734_v3 = vadd.f32 1.0, %v2767_v53  ;;  %v4081_v9 = vld [vmem:[#allocation26_spill] sm:$0xff] }
 0x38b   :  { %2772 = vrcp.f32 %v727_v0  ;;  %v4080_v0 = vld [vmem:[#allocation31_spill] sm:$0xff]  ;;  %v4085_v53 = vld [vmem:[#allocation30_spill] sm:$0xff] }
 0x38c   :  { %2774 = vrcp.f32 %v734_v3  ;;  %v4087_v3 = vld [vmem:[#allocation33_spill] sm:$0xff] }
 0x394   :  { %v2771_v37 = vpop.eup %2770 }
 0x395   :  { %v2773_v26 = vpop.eup %2772  ;;  %v739_v49 = vmul.f32 %v2771_v37, %v2769_v10  ;;  %v4082_v10 = vld [vmem:[#allocation32_spill] sm:$0xff] }
 0x396   :  { %v738_v2 = vmul.f32 %v2773_v26, %v3512_v35  ;;  %v2775_v34 = vpop.eup %2774  ;;  %v4079_v35 = vld [vmem:[#allocation25_spill] sm:$0xff]  ;;  %v4086_v37 = vld [vmem:[#allocation36_spill] sm:$0xff]  ;;  %v4088_v26 = vld [vmem:[#allocation39_spill] sm:$0xff] }
 0x398   :  { %v3584_v27 = vadd.f32 %v739_v49, %v738_v2  ;;  %v4089_v49 = vld [vmem:[#allocation34_spill] sm:$0xff]  ;;  %v4090_v2 = vld [vmem:[#allocation40_spill] sm:$0xff] }
 0x39a   :  { %2776 = vtanh.f32 %v3584_v27 }
 0x3a4   :  { %v2777_v42 = vpop.eup %2776 }
 0x3a5   :  { %v742_v18 = vmul.f32 %v2777_v42, %v2775_v34  ;;  %v4091_v34 = vld [vmem:[#allocation37_spill] sm:$0xff]  ;;  %v4092_v42 = vld [vmem:[#allocation42_spill] sm:$0xff] }
 0x3a7   :  { %746 = vst [vmem:[#allocation13 + $0x10] sm:$0xff] %v742_v18  ;;  %814 = vmatprep.mubr.f32.mxu0 %v742_v18  ;;  %885 = vmatprep.mubr.f32.mxu1 %v742_v18  ;;  %v4093_v18 = vld [vmem:[#allocation38_spill] sm:$0xff] }
 0x3a8   :  { %815 = vmatmul.mubr.f32.vlgmr.msra.gmra.mrb[6].mxu0 %v748_v14  ;;  %886 = vmatmul.mubr.f32.vlgmr.msra.gmra.mrb[6].mxu1 %v748_v14  ;;  %v4094_v14 = vld [vmem:[#allocation43_spill] sm:$0xff] }
 0x3a9   :  { %2209 = vmatpush1.bf16.msra.mxu0 %v3172_v7  ;;  %2273 = vmatpush1.bf16.msra.mxu1 %v3185_v24 }
 0x3aa   :  { %2211 = vmatprep.subr.bf16.mxu0 %v3174_v8  ;;  %2275 = vmatprep.subr.bf16.mxu1 %v3195_v32 }
 0x3ad   :  { %2213 = vmatpush1.bf16.msra.mxu0 %v3178_v13  ;;  %2277 = vmatpush1.bf16.msra.mxu1 %v3197_v36 }
 0x3ae   :  { %2215 = vmatprep.subr.bf16.mxu0 %v3181_v16  ;;  %2279 = vmatprep.subr.bf16.mxu1 %v3203_v44 }
 0x3b1   :  { %2217 = vmatpush1.bf16.msra.mxu0 %v3188_v25  ;;  %2281 = vmatpush1.bf16.msra.mxu1 %v3209_v47 }
 0x3b2   :  { %2219 = vmatprep.subr.bf16.mxu0 %v3192_v29  ;;  %2283 = vmatprep.subr.bf16.mxu1 %v3212_v51 }
 0x3b5   :  { %2221 = vmatpush1.bf16.msra.mxu0 %v3201_v41  ;;  %2285 = vmatpush1.bf16.msra.mxu1 %v3221_v61 }
 0x3b6   :  { %2223 = vmatprep.subr.bf16.mxu0 %v3206_v45  ;;  %2287 = vmatprep.subr.bf16.mxu1 %v3224_v63 }
 0x3b9   :  { %2225 = vmatpush1.bf16.msra.mxu0 %v3215_v54  ;;  %2289 = vmatpush1.bf16.msra.mxu1 %v3233_v12 }
 0x3ba   :  { %2227 = vmatprep.subr.bf16.mxu0 %v3218_v57  ;;  %2291 = vmatprep.subr.bf16.mxu1 %v3236_v15 }
 0x3bd   :  { %2229 = vmatpush1.bf16.msra.mxu0 %v3227_v5  ;;  %2293 = vmatpush1.bf16.msra.mxu1 %v3245_v30 }
 0x3be   :  { %2231 = vmatprep.subr.bf16.mxu0 %v3230_v6  ;;  %2295 = vmatprep.subr.bf16.mxu1 %v3248_v33 }
 0x3c1   :  { %2233 = vmatpush1.bf16.msra.mxu0 %v3239_v22  ;;  %2297 = vmatpush1.bf16.msra.mxu1 %v3257_v48 }
 0x3c2   :  { %2235 = vmatprep.subr.bf16.mxu0 %v3242_v23  ;;  %2299 = vmatprep.subr.bf16.mxu1 %v3260_v50 }
 0x3c5   :  { %2237 = vmatpush1.bf16.msra.mxu0 %v3251_v39  ;;  %2301 = vmatpush1.bf16.msra.mxu1 %v3269_v1 }
 0x3c6   :  { %2239 = vmatprep.subr.bf16.mxu0 %v3254_v40  ;;  %2303 = vmatprep.subr.bf16.mxu1 %v3272_v4 }
 0x3c9   :  { %2241 = vmatpush1.bf16.msra.mxu0 %v3263_v58  ;;  %2305 = vmatpush1.bf16.msra.mxu1 %v3281_v28 }
 0x3ca   :  { %2243 = vmatprep.subr.bf16.mxu0 %v3266_v59  ;;  %2307 = vmatprep.subr.bf16.mxu1 %v3284_v31 }
 0x3cd   :  { %2245 = vmatpush1.bf16.msra.mxu0 %v3275_v17  ;;  %2309 = vmatpush1.bf16.msra.mxu1 %v3293_v55 }
 0x3ce   :  { %2247 = vmatprep.subr.bf16.mxu0 %v3278_v19  ;;  %2311 = vmatprep.subr.bf16.mxu1 %v4024_v52 }
 0x3d1   :  { %2249 = vmatpush1.bf16.msra.mxu0 %v3287_v43  ;;  %2313 = vmatpush1.bf16.msra.mxu1 %v4027_v20 }
 0x3d2   :  { %2251 = vmatprep.subr.bf16.mxu0 %v3290_v46  ;;  %2315 = vmatprep.subr.bf16.mxu1 %v4028_v56 }
 0x3d5   :  { %2253 = vmatpush1.bf16.msra.mxu0 %v4079_v35  ;;  %2317 = vmatpush1.bf16.msra.mxu1 %v4080_v0 }
 0x3d6   :  { %2255 = vmatprep.subr.bf16.mxu0 %v4081_v9  ;;  %2319 = vmatprep.subr.bf16.mxu1 %v4082_v10 }
 0x3d9   :  { %2257 = vmatpush1.bf16.msra.mxu0 %v4083_v38  ;;  %2321 = vmatpush1.bf16.msra.mxu1 %v4084_v60  ;;  %v4095_v60 = vld [vmem:[#allocation41_spill] sm:$0xff]  ;;  %v4099_v38 = vld [vmem:[#allocation24_spill] sm:$0xff] }
 0x3da   :  { %2259 = vmatprep.subr.bf16.mxu0 %v4085_v53  ;;  %2323 = vmatprep.subr.bf16.mxu1 %v4086_v37  ;;  %v4096_v53 = vld [vmem:[#allocation44_spill] sm:$0xff]  ;;  %v4097_v37 = vld [vmem:[#allocation22_spill] sm:$0xff] }
 0x3dd   :  { %2261 = vmatpush1.bf16.msra.mxu0 %v4087_v3  ;;  %2325 = vmatpush1.bf16.msra.mxu1 %v4088_v26  ;;  %v4098_v3 = vld [vmem:[#allocation23_spill] sm:$0xff] }
 0x3de   :  { %2263 = vmatprep.subr.bf16.mxu0 %v4089_v49  ;;  %2327 = vmatprep.subr.bf16.mxu1 %v4090_v2 }
 0x3e1   :  { %2265 = vmatpush1.bf16.msra.mxu0 %v4091_v34  ;;  %2329 = vmatpush1.bf16.msra.mxu1 %v4092_v42 }
 0x3e2   :  { %2267 = vmatprep.subr.bf16.mxu0 %v4093_v18  ;;  %2331 = vmatprep.subr.bf16.mxu1 %v4094_v14 }
 0x3e5   :  { %2269 = vmatpush1.bf16.msra.mxu0 %v4095_v60  ;;  %2333 = vmatpush1.bf16.msra.mxu1 %v4096_v53 }
 0x3e6   :  { %2335 = vmatprep.subr.bf16.mxu0 %v4097_v37  ;;  %2399 = vmatprep.subr.bf16.mxu1 %v4098_v3 }
 0x47b   :  { %v816_v26 = vpop.f32.mrb[6].mxu0  ;;  %v887_v49 = vpop.f32.mrb[6].mxu1 }
 0x47c   :  { %v817_v2 = vadd.f32 %v816_v26, %v4099_v38  ;;  %v818_v10 = vpop.f32.mrb[7].mxu0  ;;  %v889_v34 = vpop.f32.mrb[7].mxu1  ;;  %v888_v53 = vadd.f32 %v887_v49, %v3437_v11 }
 0x47d   :  { %v819_v42 = vadd.f32 %v818_v10, %v4056_v62  ;;  %v890_v60 = vadd.f32 %v889_v34, %v4057_v21 }
 0x47e   :  { %v1679_v9 = vmul.f32 -1.442695, %v817_v2 }
 0x47f   :  { %v1680_v18 = vmul.f32 -1.442695, %v819_v42  ;;  %v1681_v14 = vmul.f32 -1.442695, %v890_v60 }
 0x480   :  { %2778 = vpow2.f32 %v1679_v9 }
 0x481   :  { %2780 = vpow2.f32 %v1680_v18 }
 0x482   :  { %2782 = vpow2.f32 %v1681_v14  ;;  %v4105_v14 = vld [vmem:[#allocation35_spill] sm:$0xff] }
 0x483   :  { %2784 = vtanh.f32 %v888_v53  ;;  %v922_v53 = vld [vmem:[#allocation4 + $0x20] sm:$0xff] }
 0x48a   :  { %v2779_v37 = vpop.eup %2778 }
 0x48b   :  { %v2781_v3 = vpop.eup %2780  ;;  %v895_v0 = vadd.f32 1.0, %v2779_v37 }
 0x48c   :  { %v901_v35 = vadd.f32 1.0, %v2781_v3  ;;  %v2783_v26 = vpop.eup %2782  ;;  %v4104_v3 = vld [vmem:[#allocation29_spill] sm:$0xff] }
 0x48d   :  { %2786 = vrcp.f32 %v895_v0  ;;  %v2785_v38 = vpop.eup %2784  ;;  %v908_v2 = vadd.f32 1.0, %v2783_v26  ;;  %v4102_v0 = vld [vmem:[#allocation26_spill] sm:$0xff] }
 0x48e   :  { %2788 = vrcp.f32 %v901_v35  ;;  %v4101_v35 = vld [vmem:[#allocation31_spill] sm:$0xff]  ;;  %v4106_v26 = vld [vmem:[#allocation30_spill] sm:$0xff] }
 0x48f   :  { %2790 = vrcp.f32 %v908_v2  ;;  %v4108_v2 = vld [vmem:[#allocation33_spill] sm:$0xff] }
 0x497   :  { %v2787_v10 = vpop.eup %2786 }
 0x498   :  { %v2789_v42 = vpop.eup %2788  ;;  %v913_v9 = vmul.f32 %v2787_v10, %v2785_v38  ;;  %v4103_v38 = vld [vmem:[#allocation32_spill] sm:$0xff] }
 0x499   :  { %v912_v18 = vmul.f32 %v2789_v42, %v3584_v27  ;;  %v2791_v60 = vpop.eup %2790  ;;  %v4100_v27 = vld [vmem:[#allocation25_spill] sm:$0xff]  ;;  %v4107_v10 = vld [vmem:[#allocation36_spill] sm:$0xff]  ;;  %v4109_v42 = vld [vmem:[#allocation39_spill] sm:$0xff] }
 0x49b   :  { %v3656_v34 = vadd.f32 %v913_v9, %v912_v18  ;;  %v4110_v9 = vld [vmem:[#allocation34_spill] sm:$0xff]  ;;  %v4111_v18 = vld [vmem:[#allocation40_spill] sm:$0xff] }
 0x49d   :  { %2792 = vtanh.f32 %v3656_v34 }
 0x4a7   :  { %v2793_v49 = vpop.eup %2792 }
 0x4a8   :  { %v916_v37 = vmul.f32 %v2793_v49, %v2791_v60  ;;  %v4112_v60 = vld [vmem:[#allocation37_spill] sm:$0xff]  ;;  %v4113_v49 = vld [vmem:[#allocation42_spill] sm:$0xff] }
 0x4aa   :  { %920 = vst [vmem:[#allocation13 + $0x18] sm:$0xff] %v916_v37  ;;  %988 = vmatprep.mubr.f32.mxu0 %v916_v37  ;;  %1059 = vmatprep.mubr.f32.mxu1 %v916_v37  ;;  %v4114_v37 = vld [vmem:[#allocation38_spill] sm:$0xff] }
 0x4ab   :  { %989 = vmatmul.mubr.f32.vlgmr.msra.gmra.mrb[8].mxu0 %v922_v53  ;;  %1060 = vmatmul.mubr.f32.vlgmr.msra.gmra.mrb[8].mxu1 %v922_v53  ;;  %v4115_v53 = vld [vmem:[#allocation43_spill] sm:$0xff] }
 0x4ac   :  { %2337 = vmatpush1.bf16.msra.mxu0 %v3172_v7  ;;  %2401 = vmatpush1.bf16.msra.mxu1 %v3185_v24 }
 0x4ad   :  { %2339 = vmatprep.subr.bf16.mxu0 %v3174_v8  ;;  %2403 = vmatprep.subr.bf16.mxu1 %v3195_v32 }
 0x4b0   :  { %2341 = vmatpush1.bf16.msra.mxu0 %v3178_v13  ;;  %2405 = vmatpush1.bf16.msra.mxu1 %v3197_v36 }
 0x4b1   :  { %2343 = vmatprep.subr.bf16.mxu0 %v3181_v16  ;;  %2407 = vmatprep.subr.bf16.mxu1 %v3203_v44 }
 0x4b4   :  { %2345 = vmatpush1.bf16.msra.mxu0 %v3188_v25  ;;  %2409 = vmatpush1.bf16.msra.mxu1 %v3209_v47 }
 0x4b5   :  { %2347 = vmatprep.subr.bf16.mxu0 %v3192_v29  ;;  %2411 = vmatprep.subr.bf16.mxu1 %v3212_v51 }
 0x4b8   :  { %2349 = vmatpush1.bf16.msra.mxu0 %v3201_v41  ;;  %2413 = vmatpush1.bf16.msra.mxu1 %v3221_v61 }
 0x4b9   :  { %2351 = vmatprep.subr.bf16.mxu0 %v3206_v45  ;;  %2415 = vmatprep.subr.bf16.mxu1 %v3224_v63 }
 0x4bc   :  { %2353 = vmatpush1.bf16.msra.mxu0 %v3215_v54  ;;  %2417 = vmatpush1.bf16.msra.mxu1 %v3233_v12 }
 0x4bd   :  { %2355 = vmatprep.subr.bf16.mxu0 %v3218_v57  ;;  %2419 = vmatprep.subr.bf16.mxu1 %v3236_v15 }
 0x4c0   :  { %2357 = vmatpush1.bf16.msra.mxu0 %v3227_v5  ;;  %2421 = vmatpush1.bf16.msra.mxu1 %v3245_v30 }
 0x4c1   :  { %2359 = vmatprep.subr.bf16.mxu0 %v3230_v6  ;;  %2423 = vmatprep.subr.bf16.mxu1 %v3248_v33 }
 0x4c4   :  { %2361 = vmatpush1.bf16.msra.mxu0 %v3239_v22  ;;  %2425 = vmatpush1.bf16.msra.mxu1 %v3257_v48 }
 0x4c5   :  { %2363 = vmatprep.subr.bf16.mxu0 %v3242_v23  ;;  %2427 = vmatprep.subr.bf16.mxu1 %v3260_v50 }
 0x4c8   :  { %2365 = vmatpush1.bf16.msra.mxu0 %v3251_v39  ;;  %2429 = vmatpush1.bf16.msra.mxu1 %v3269_v1 }
 0x4c9   :  { %2367 = vmatprep.subr.bf16.mxu0 %v3254_v40  ;;  %2431 = vmatprep.subr.bf16.mxu1 %v3272_v4 }
 0x4cc   :  { %2369 = vmatpush1.bf16.msra.mxu0 %v3263_v58  ;;  %2433 = vmatpush1.bf16.msra.mxu1 %v3281_v28 }
 0x4cd   :  { %2371 = vmatprep.subr.bf16.mxu0 %v3266_v59  ;;  %2435 = vmatprep.subr.bf16.mxu1 %v3284_v31 }
 0x4d0   :  { %2373 = vmatpush1.bf16.msra.mxu0 %v3275_v17  ;;  %2437 = vmatpush1.bf16.msra.mxu1 %v3293_v55 }
 0x4d1   :  { %2375 = vmatprep.subr.bf16.mxu0 %v3278_v19  ;;  %2439 = vmatprep.subr.bf16.mxu1 %v4024_v52 }
 0x4d4   :  { %2377 = vmatpush1.bf16.msra.mxu0 %v3287_v43  ;;  %2441 = vmatpush1.bf16.msra.mxu1 %v4027_v20 }
 0x4d5   :  { %2379 = vmatprep.subr.bf16.mxu0 %v3290_v46  ;;  %2443 = vmatprep.subr.bf16.mxu1 %v4028_v56 }
 0x4d8   :  { %2381 = vmatpush1.bf16.msra.mxu0 %v4100_v27  ;;  %2445 = vmatpush1.bf16.msra.mxu1 %v4101_v35 }
 0x4d9   :  { %2383 = vmatprep.subr.bf16.mxu0 %v4102_v0  ;;  %2447 = vmatprep.subr.bf16.mxu1 %v4103_v38 }
 0x4dc   :  { %2385 = vmatpush1.bf16.msra.mxu0 %v4104_v3  ;;  %2449 = vmatpush1.bf16.msra.mxu1 %v4105_v14  ;;  %v4116_v14 = vld [vmem:[#allocation41_spill] sm:$0xff]  ;;  %v4120_v3 = vld [vmem:[#allocation24_spill] sm:$0xff] }
 0x4dd   :  { %2387 = vmatprep.subr.bf16.mxu0 %v4106_v26  ;;  %2451 = vmatprep.subr.bf16.mxu1 %v4107_v10  ;;  %v4117_v26 = vld [vmem:[#allocation44_spill] sm:$0xff]  ;;  %v4118_v10 = vld [vmem:[#allocation22_spill] sm:$0xff] }
 0x4e0   :  { %2389 = vmatpush1.bf16.msra.mxu0 %v4108_v2  ;;  %2453 = vmatpush1.bf16.msra.mxu1 %v4109_v42  ;;  %v4119_v2 = vld [vmem:[#allocation23_spill] sm:$0xff] }
 0x4e1   :  { %2391 = vmatprep.subr.bf16.mxu0 %v4110_v9  ;;  %2455 = vmatprep.subr.bf16.mxu1 %v4111_v18 }
 0x4e4   :  { %2393 = vmatpush1.bf16.msra.mxu0 %v4112_v60  ;;  %2457 = vmatpush1.bf16.msra.mxu1 %v4113_v49 }
 0x4e5   :  { %2395 = vmatprep.subr.bf16.mxu0 %v4114_v37  ;;  %2459 = vmatprep.subr.bf16.mxu1 %v4115_v53 }
 0x4e8   :  { %2397 = vmatpush1.bf16.msra.mxu0 %v4116_v14  ;;  %2461 = vmatpush1.bf16.msra.mxu1 %v4117_v26 }
 0x4e9   :  { %2463 = vmatprep.subr.bf16.mxu0 %v4118_v10  ;;  %2527 = vmatprep.subr.bf16.mxu1 %v4119_v2 }
 0x57e   :  { %v990_v42 = vpop.f32.mrb[8].mxu0  ;;  %v1061_v9 = vpop.f32.mrb[8].mxu1 }
 0x57f   :  { %v991_v18 = vadd.f32 %v990_v42, %v4120_v3  ;;  %v992_v38 = vpop.f32.mrb[9].mxu0  ;;  %v1063_v60 = vpop.f32.mrb[9].mxu1  ;;  %v1062_v26 = vadd.f32 %v1061_v9, %v3437_v11  ;;  %v4125_v9 = vld [vmem:[#allocation29_spill] sm:$0xff] }
 0x580   :  { %v993_v49 = vadd.f32 %v992_v38, %v4056_v62  ;;  %v1064_v14 = vadd.f32 %v1063_v60, %v4057_v21  ;;  %v4126_v60 = vld [vmem:[#allocation35_spill] sm:$0xff] }
 0x581   :  { %v1682_v0 = vmul.f32 -1.442695, %v991_v18 }
 0x582   :  { %v1683_v37 = vmul.f32 -1.442695, %v993_v49  ;;  %v1684_v53 = vmul.f32 -1.442695, %v1064_v14 }
 0x583   :  { %2794 = vpow2.f32 %v1682_v0 }
 0x584   :  { %2796 = vpow2.f32 %v1683_v37  ;;  %v4127_v37 = vld [vmem:[#allocation30_spill] sm:$0xff] }
 0x585   :  { %2798 = vpow2.f32 %v1684_v53  ;;  %v4128_v53 = vld [vmem:[#allocation36_spill] sm:$0xff] }
 0x586   :  { %2800 = vtanh.f32 %v1062_v26  ;;  %v1096_v26 = vld [vmem:[#allocation4 + $0x28] sm:$0xff] }
 0x58d   :  { %v2795_v10 = vpop.eup %2794 }
 0x58e   :  { %v2797_v2 = vpop.eup %2796  ;;  %v1069_v35 = vadd.f32 1.0, %v2795_v10 }
 0x58f   :  { %v1075_v27 = vadd.f32 1.0, %v2797_v2  ;;  %v2799_v3 = vpop.eup %2798  ;;  %v4124_v2 = vld [vmem:[#allocation32_spill] sm:$0xff] }
 0x590   :  { %2802 = vrcp.f32 %v1069_v35  ;;  %v2801_v42 = vpop.eup %2800  ;;  %v1082_v38 = vadd.f32 1.0, %v2799_v3  ;;  %v4123_v35 = vld [vmem:[#allocation26_spill] sm:$0xff]  ;;  %v4129_v3 = vld [vmem:[#allocation33_spill] sm:$0xff] }
 0x591   :  { %2804 = vrcp.f32 %v1075_v27  ;;  %v4122_v27 = vld [vmem:[#allocation31_spill] sm:$0xff] }
 0x592   :  { %2806 = vrcp.f32 %v1082_v38  ;;  %v4132_v38 = vld [vmem:[#allocation40_spill] sm:$0xff] }
 0x59a   :  { %v2803_v62 = vpop.eup %2802 }
 0x59b   :  { %v2805_v18 = vpop.eup %2804  ;;  %v1087_v0 = vmul.f32 %v2803_v62, %v2801_v42  ;;  %v4130_v42 = vld [vmem:[#allocation39_spill] sm:$0xff]  ;;  %v4131_v62 = vld [vmem:[#allocation34_spill] sm:$0xff] }
 0x59c   :  { %v1086_v49 = vmul.f32 %v2805_v18, %v3656_v34  ;;  %v2807_v11 = vpop.eup %2806  ;;  %v4121_v34 = vld [vmem:[#allocation25_spill] sm:$0xff] }
 0x59d   :  { %v4133_v18 = vld [vmem:[#allocation37_spill] sm:$0xff] }
 0x59e   :  { %v3728_v21 = vadd.f32 %v1087_v0, %v1086_v49  ;;  %v4134_v0 = vld [vmem:[#allocation42_spill] sm:$0xff] }
 0x59f   :  { %v4135_v49 = vld [vmem:[#allocation38_spill] sm:$0xff] }
 0x5a0   :  { %2808 = vtanh.f32 %v3728_v21 }
 0x5aa   :  { %v2809_v14 = vpop.eup %2808 }
 0x5ab   :  { %v1090_v10 = vmul.f32 %v2809_v14, %v2807_v11  ;;  %v4136_v11 = vld [vmem:[#allocation43_spill] sm:$0xff]  ;;  %v4137_v14 = vld [vmem:[#allocation41_spill] sm:$0xff] }
 0x5ad   :  { %1094 = vst [vmem:[#allocation13 + $0x20] sm:$0xff] %v1090_v10  ;;  %1162 = vmatprep.mubr.f32.mxu0 %v1090_v10  ;;  %1233 = vmatprep.mubr.f32.mxu1 %v1090_v10  ;;  %v4138_v10 = vld [vmem:[#allocation44_spill] sm:$0xff] }
 0x5ae   :  { %1163 = vmatmul.mubr.f32.vlgmr.msra.gmra.mrb[10].mxu0 %v1096_v26  ;;  %1234 = vmatmul.mubr.f32.vlgmr.msra.gmra.mrb[10].mxu1 %v1096_v26  ;;  %v4139_v26 = vld [vmem:[#allocation22_spill] sm:$0xff] }
 0x5af   :  { %2465 = vmatpush1.bf16.msra.mxu0 %v3172_v7  ;;  %2529 = vmatpush1.bf16.msra.mxu1 %v3185_v24 }
 0x5b0   :  { %2467 = vmatprep.subr.bf16.mxu0 %v3174_v8  ;;  %2531 = vmatprep.subr.bf16.mxu1 %v3195_v32 }
 0x5b3   :  { %2469 = vmatpush1.bf16.msra.mxu0 %v3178_v13  ;;  %2533 = vmatpush1.bf16.msra.mxu1 %v3197_v36 }
 0x5b4   :  { %2471 = vmatprep.subr.bf16.mxu0 %v3181_v16  ;;  %2535 = vmatprep.subr.bf16.mxu1 %v3203_v44 }
 0x5b7   :  { %2473 = vmatpush1.bf16.msra.mxu0 %v3188_v25  ;;  %2537 = vmatpush1.bf16.msra.mxu1 %v3209_v47 }
 0x5b8   :  { %2475 = vmatprep.subr.bf16.mxu0 %v3192_v29  ;;  %2539 = vmatprep.subr.bf16.mxu1 %v3212_v51 }
 0x5bb   :  { %2477 = vmatpush1.bf16.msra.mxu0 %v3201_v41  ;;  %2541 = vmatpush1.bf16.msra.mxu1 %v3221_v61 }
 0x5bc   :  { %2479 = vmatprep.subr.bf16.mxu0 %v3206_v45  ;;  %2543 = vmatprep.subr.bf16.mxu1 %v3224_v63 }
 0x5bf   :  { %2481 = vmatpush1.bf16.msra.mxu0 %v3215_v54  ;;  %2545 = vmatpush1.bf16.msra.mxu1 %v3233_v12 }
 0x5c0   :  { %2483 = vmatprep.subr.bf16.mxu0 %v3218_v57  ;;  %2547 = vmatprep.subr.bf16.mxu1 %v3236_v15 }
 0x5c3   :  { %2485 = vmatpush1.bf16.msra.mxu0 %v3227_v5  ;;  %2549 = vmatpush1.bf16.msra.mxu1 %v3245_v30 }
 0x5c4   :  { %2487 = vmatprep.subr.bf16.mxu0 %v3230_v6  ;;  %2551 = vmatprep.subr.bf16.mxu1 %v3248_v33 }
 0x5c7   :  { %2489 = vmatpush1.bf16.msra.mxu0 %v3239_v22  ;;  %2553 = vmatpush1.bf16.msra.mxu1 %v3257_v48 }
 0x5c8   :  { %2491 = vmatprep.subr.bf16.mxu0 %v3242_v23  ;;  %2555 = vmatprep.subr.bf16.mxu1 %v3260_v50 }
 0x5cb   :  { %2493 = vmatpush1.bf16.msra.mxu0 %v3251_v39  ;;  %2557 = vmatpush1.bf16.msra.mxu1 %v3269_v1 }
 0x5cc   :  { %2495 = vmatprep.subr.bf16.mxu0 %v3254_v40  ;;  %2559 = vmatprep.subr.bf16.mxu1 %v3272_v4 }
 0x5cf   :  { %2497 = vmatpush1.bf16.msra.mxu0 %v3263_v58  ;;  %2561 = vmatpush1.bf16.msra.mxu1 %v3281_v28 }
 0x5d0   :  { %2499 = vmatprep.subr.bf16.mxu0 %v3266_v59  ;;  %2563 = vmatprep.subr.bf16.mxu1 %v3284_v31 }
 0x5d3   :  { %2501 = vmatpush1.bf16.msra.mxu0 %v3275_v17  ;;  %2565 = vmatpush1.bf16.msra.mxu1 %v3293_v55 }
 0x5d4   :  { %2503 = vmatprep.subr.bf16.mxu0 %v3278_v19  ;;  %2567 = vmatprep.subr.bf16.mxu1 %v4024_v52 }
 0x5d7   :  { %2505 = vmatpush1.bf16.msra.mxu0 %v3287_v43  ;;  %2569 = vmatpush1.bf16.msra.mxu1 %v4027_v20 }
 0x5d8   :  { %2507 = vmatprep.subr.bf16.mxu0 %v3290_v46  ;;  %2571 = vmatprep.subr.bf16.mxu1 %v4028_v56 }
 0x5db   :  { %2509 = vmatpush1.bf16.msra.mxu0 %v4121_v34  ;;  %2573 = vmatpush1.bf16.msra.mxu1 %v4122_v27 }
 0x5dc   :  { %2511 = vmatprep.subr.bf16.mxu0 %v4123_v35  ;;  %2575 = vmatprep.subr.bf16.mxu1 %v4124_v2 }
 0x5df   :  { %2513 = vmatpush1.bf16.msra.mxu0 %v4125_v9  ;;  %2577 = vmatpush1.bf16.msra.mxu1 %v4126_v60  ;;  %v3804_v60 = vld [vmem:[#allocation12 + $0x10] sm:$0xff] }
 0x5e0   :  { %2515 = vmatprep.subr.bf16.mxu0 %v4127_v37  ;;  %2579 = vmatprep.subr.bf16.mxu1 %v4128_v53  ;;  %v3795_v53 = vld [vmem:[#allocation12] sm:$0xff]  ;;  %v3798_v37 = vld [vmem:[#allocation12 + $0x8] sm:$0xff] }
 0x5e1   :  { %4141 = vst [vmem:[#allocation27_spill] sm:$0xff] %v3795_v53  ;;  %4142 = vst [vmem:[#allocation28_spill] sm:$0xff] %v3798_v37 }
 0x5e3   :  { %2517 = vmatpush1.bf16.msra.mxu0 %v4129_v3  ;;  %2581 = vmatpush1.bf16.msra.mxu1 %v4130_v42  ;;  %v4140_v3 = vld [vmem:[#allocation23_spill] sm:$0xff] }
 0x5e4   :  { %2519 = vmatprep.subr.bf16.mxu0 %v4131_v62  ;;  %2583 = vmatprep.subr.bf16.mxu1 %v4132_v38 }
 0x5e7   :  { %2521 = vmatpush1.bf16.msra.mxu0 %v4133_v18  ;;  %2585 = vmatpush1.bf16.msra.mxu1 %v4134_v0 }
 0x5e8   :  { %2523 = vmatprep.subr.bf16.mxu0 %v4135_v49  ;;  %2587 = vmatprep.subr.bf16.mxu1 %v4136_v11 }
 0x5eb   :  { %2525 = vmatpush1.bf16.msra.mxu0 %v4137_v14  ;;  %2589 = vmatpush1.bf16.msra.mxu1 %v4138_v10  ;;  %v3801_v10 = vld [vmem:[#allocation12 + $0x18] sm:$0xff] }
 0x5ec   :  { %2591 = vmatprep.subr.bf16.mxu0 %v4139_v26  ;;  %2655 = vmatprep.subr.bf16.mxu1 %v4140_v3 }
 0x681   :  { %v1164_v42 = vpop.f32.mrb[10].mxu0  ;;  %v1235_v62 = vpop.f32.mrb[10].mxu1 }
 0x682   :  { %v1165_v18 = vadd.f32 %v3795_v53, %v1164_v42  ;;  %v1166_v38 = vpop.f32.mrb[11].mxu0  ;;  %v1237_v0 = vpop.f32.mrb[11].mxu1  ;;  %v1236_v9 = vadd.f32 %v3804_v60, %v1235_v62 }
 0x683   :  { %v1167_v11 = vadd.f32 %v3798_v37, %v1166_v38  ;;  %v1238_v3 = vadd.f32 %v3801_v10, %v1237_v0 }
 0x684   :  { %v1685_v49 = vmul.f32 -1.442695, %v1165_v18 }
 0x685   :  { %v1686_v14 = vmul.f32 -1.442695, %v1167_v11  ;;  %v1687_v26 = vmul.f32 -1.442695, %v1238_v3 }
 0x686   :  { %2810 = vpow2.f32 %v1685_v49 }
 0x687   :  { %2812 = vpow2.f32 %v1686_v14 }
 0x688   :  { %2814 = vpow2.f32 %v1687_v26 }
 0x689   :  { %2816 = vtanh.f32 %v1236_v9  ;;  %v1270_v9 = vld [vmem:[#allocation4 + $0x30] sm:$0xff] }
 0x690   :  { %v2811_v42 = vpop.eup %2810 }
 0x691   :  { %v2813_v53 = vpop.eup %2812  ;;  %v1243_v2 = vadd.f32 1.0, %v2811_v42 }
 0x692   :  { %v1249_v35 = vadd.f32 1.0, %v2813_v53  ;;  %v2815_v38 = vpop.eup %2814 }
 0x693   :  { %2818 = vrcp.f32 %v1243_v2  ;;  %v2817_v18 = vpop.eup %2816  ;;  %v1256_v11 = vadd.f32 1.0, %v2815_v38 }
 0x694   :  { %2820 = vrcp.f32 %v1249_v35 }
 0x695   :  { %2822 = vrcp.f32 %v1256_v11 }
 0x69d   :  { %v2819_v49 = vpop.eup %2818 }
 0x69e   :  { %v2821_v14 = vpop.eup %2820  ;;  %v1261_v37 = vmul.f32 %v2819_v49, %v2817_v18 }
 0x69f   :  { %v1260_v0 = vmul.f32 %v2821_v14, %v3728_v21  ;;  %v2823_v62 = vpop.eup %2822  ;;  %v1444_v21 = vld [vmem:[#allocation4 + $0x38] sm:$0xff] }
 0x6a1   :  { %v3808_v3 = vadd.f32 %v1261_v37, %v1260_v0 }
 0x6a3   :  { %2824 = vtanh.f32 %v3808_v3 }
 0x6ad   :  { %v2825_v26 = vpop.eup %2824 }
 0x6ae   :  { %v1264_v42 = vmul.f32 %v2825_v26, %v2823_v62 }
 0x6b0   :  { %1268 = vst [vmem:[#allocation13 + $0x28] sm:$0xff] %v1264_v42  ;;  %1336 = vmatprep.mubr.f32.mxu0 %v1264_v42  ;;  %1407 = vmatprep.mubr.f32.mxu1 %v1264_v42 }
 0x6b1   :  { %1337 = vmatmul.mubr.f32.vlgmr.msra.gmra.mrb[12].mxu0 %v1270_v9  ;;  %1408 = vmatmul.mubr.f32.vlgmr.msra.gmra.mrb[12].mxu1 %v1270_v9 }
 0x6b2   :  { %2593 = vmatpush1.bf16.msra.mxu0 %v3172_v7  ;;  %2657 = vmatpush1.bf16.msra.mxu1 %v3185_v24  ;;  %v4143_v7 = vld [vmem:[#allocation26_spill] sm:$0xff] }
 0x6b3   :  { %2595 = vmatprep.subr.bf16.mxu0 %v3174_v8  ;;  %2659 = vmatprep.subr.bf16.mxu1 %v3195_v32  ;;  %v4144_v8 = vld [vmem:[#allocation32_spill] sm:$0xff]  ;;  %v4147_v24 = vld [vmem:[#allocation30_spill] sm:$0xff]  ;;  %v4150_v32 = vld [vmem:[#allocation39_spill] sm:$0xff] }
 0x6b6   :  { %2597 = vmatpush1.bf16.msra.mxu0 %v3178_v13  ;;  %2661 = vmatpush1.bf16.msra.mxu1 %v3197_v36  ;;  %v4145_v13 = vld [vmem:[#allocation29_spill] sm:$0xff]  ;;  %v4151_v36 = vld [vmem:[#allocation34_spill] sm:$0xff] }
 0x6b7   :  { %2599 = vmatprep.subr.bf16.mxu0 %v3181_v16  ;;  %2663 = vmatprep.subr.bf16.mxu1 %v3203_v44  ;;  %v4146_v16 = vld [vmem:[#allocation35_spill] sm:$0xff]  ;;  %v4153_v44 = vld [vmem:[#allocation37_spill] sm:$0xff] }
 0x6ba   :  { %2601 = vmatpush1.bf16.msra.mxu0 %v3188_v25  ;;  %2665 = vmatpush1.bf16.msra.mxu1 %v3209_v47  ;;  %v4148_v25 = vld [vmem:[#allocation36_spill] sm:$0xff]  ;;  %v4155_v47 = vld [vmem:[#allocation38_spill] sm:$0xff] }
 0x6bb   :  { %2603 = vmatprep.subr.bf16.mxu0 %v3192_v29  ;;  %2667 = vmatprep.subr.bf16.mxu1 %v3212_v51  ;;  %v4149_v29 = vld [vmem:[#allocation33_spill] sm:$0xff]  ;;  %v4156_v51 = vld [vmem:[#allocation43_spill] sm:$0xff] }
 0x6be   :  { %2605 = vmatpush1.bf16.msra.mxu0 %v3201_v41  ;;  %2669 = vmatpush1.bf16.msra.mxu1 %v3221_v61  ;;  %v4152_v41 = vld [vmem:[#allocation40_spill] sm:$0xff] }
 0x6bf   :  { %2607 = vmatprep.subr.bf16.mxu0 %v3206_v45  ;;  %2671 = vmatprep.subr.bf16.mxu1 %v3224_v63  ;;  %v4154_v45 = vld [vmem:[#allocation42_spill] sm:$0xff] }
 0x6c2   :  { %2609 = vmatpush1.bf16.msra.mxu0 %v3215_v54  ;;  %2673 = vmatpush1.bf16.msra.mxu1 %v3233_v12  ;;  %v4157_v54 = vld [vmem:[#allocation41_spill] sm:$0xff] }
 0x6c3   :  { %2611 = vmatprep.subr.bf16.mxu0 %v3218_v57  ;;  %2675 = vmatprep.subr.bf16.mxu1 %v3236_v15  ;;  %v4158_v57 = vld [vmem:[#allocation44_spill] sm:$0xff] }
 0x6c6   :  { %2613 = vmatpush1.bf16.msra.mxu0 %v3227_v5  ;;  %2677 = vmatpush1.bf16.msra.mxu1 %v3245_v30  ;;  %v4159_v5 = vld [vmem:[#allocation27_spill] sm:$0xff] }
 0x6c7   :  { %2615 = vmatprep.subr.bf16.mxu0 %v3230_v6  ;;  %2679 = vmatprep.subr.bf16.mxu1 %v3248_v33 }
 0x6ca   :  { %2617 = vmatpush1.bf16.msra.mxu0 %v3239_v22  ;;  %2681 = vmatpush1.bf16.msra.mxu1 %v3257_v48  ;;  %v4160_v22 = vld [vmem:[#allocation28_spill] sm:$0xff] }
 0x6cb   :  { %2619 = vmatprep.subr.bf16.mxu0 %v3242_v23  ;;  %2683 = vmatprep.subr.bf16.mxu1 %v3260_v50 }
 0x6ce   :  { %2621 = vmatpush1.bf16.msra.mxu0 %v3251_v39  ;;  %2685 = vmatpush1.bf16.msra.mxu1 %v3269_v1 }
 0x6cf   :  { %2623 = vmatprep.subr.bf16.mxu0 %v3254_v40  ;;  %2687 = vmatprep.subr.bf16.mxu1 %v3272_v4 }
 0x6d2   :  { %2625 = vmatpush1.bf16.msra.mxu0 %v3263_v58  ;;  %2689 = vmatpush1.bf16.msra.mxu1 %v3281_v28 }
 0x6d3   :  { %2627 = vmatprep.subr.bf16.mxu0 %v3266_v59  ;;  %2691 = vmatprep.subr.bf16.mxu1 %v3284_v31 }
 0x6d6   :  { %2629 = vmatpush1.bf16.msra.mxu0 %v3275_v17  ;;  %2693 = vmatpush1.bf16.msra.mxu1 %v3293_v55 }
 0x6d7   :  { %2631 = vmatprep.subr.bf16.mxu0 %v3278_v19  ;;  %2695 = vmatprep.subr.bf16.mxu1 %v4024_v52 }
 0x6da   :  { %2633 = vmatpush1.bf16.msra.mxu0 %v3287_v43  ;;  %2697 = vmatpush1.bf16.msra.mxu1 %v4027_v20 }
 0x6db   :  { %2635 = vmatprep.subr.bf16.mxu0 %v3290_v46  ;;  %2699 = vmatprep.subr.bf16.mxu1 %v4028_v56 }
 0x6de   :  { %2637 = vmatpush1.bf16.msra.mxu0 %v4121_v34  ;;  %2701 = vmatpush1.bf16.msra.mxu1 %v4122_v27 }
 0x6df   :  { %2639 = vmatprep.subr.bf16.mxu0 %v4143_v7  ;;  %2703 = vmatprep.subr.bf16.mxu1 %v4144_v8 }
 0x6e2   :  { %2641 = vmatpush1.bf16.msra.mxu0 %v4145_v13  ;;  %2705 = vmatpush1.bf16.msra.mxu1 %v4146_v16 }
 0x6e3   :  { %2643 = vmatprep.subr.bf16.mxu0 %v4147_v24  ;;  %2707 = vmatprep.subr.bf16.mxu1 %v4148_v25 }
 0x6e6   :  { %2645 = vmatpush1.bf16.msra.mxu0 %v4149_v29  ;;  %2709 = vmatpush1.bf16.msra.mxu1 %v4150_v32 }
 0x6e7   :  { %2647 = vmatprep.subr.bf16.mxu0 %v4151_v36  ;;  %2711 = vmatprep.subr.bf16.mxu1 %v4152_v41 }
 0x6ea   :  { %2649 = vmatpush1.bf16.msra.mxu0 %v4153_v44  ;;  %2713 = vmatpush1.bf16.msra.mxu1 %v4154_v45 }
 0x6eb   :  { %2651 = vmatprep.subr.bf16.mxu0 %v4155_v47  ;;  %2715 = vmatprep.subr.bf16.mxu1 %v4156_v51 }
 0x6ee   :  { %2653 = vmatpush1.bf16.msra.mxu0 %v4157_v54  ;;  %2717 = vmatpush1.bf16.msra.mxu1 %v4158_v57 }
 0x784   :  { %v1338_v61 = vpop.f32.mrb[12].mxu0  ;;  %v1409_v63 = vpop.f32.mrb[12].mxu1 }
 0x785   :  { %v1339_v6 = vadd.f32 %v4159_v5, %v1338_v61  ;;  %v1340_v12 = vpop.f32.mrb[13].mxu0  ;;  %v1411_v15 = vpop.f32.mrb[13].mxu1  ;;  %v1410_v48 = vadd.f32 %v3804_v60, %v1409_v63 }
 0x786   :  { %v1341_v23 = vadd.f32 %v4160_v22, %v1340_v12  ;;  %v1412_v39 = vadd.f32 %v3801_v10, %v1411_v15 }
 0x787   :  { %v1688_v30 = vmul.f32 -1.442695, %v1339_v6 }
 0x788   :  { %v1689_v33 = vmul.f32 -1.442695, %v1341_v23  ;;  %v1690_v40 = vmul.f32 -1.442695, %v1412_v39 }
 0x789   :  { %2826 = vpow2.f32 %v1688_v30 }
 0x78a   :  { %2828 = vpow2.f32 %v1689_v33 }
 0x78b   :  { %2830 = vpow2.f32 %v1690_v40 }
 0x78c   :  { %2832 = vtanh.f32 %v1410_v48 }
 0x793   :  { %v2827_v50 = vpop.eup %2826 }
 0x794   :  { %v2829_v58 = vpop.eup %2828  ;;  %v1417_v59 = vadd.f32 1.0, %v2827_v50 }
 0x795   :  { %v1423_v1 = vadd.f32 1.0, %v2829_v58  ;;  %v2831_v4 = vpop.eup %2830 }
 0x796   :  { %2834 = vrcp.f32 %v1417_v59  ;;  %v2833_v17 = vpop.eup %2832  ;;  %v1430_v28 = vadd.f32 1.0, %v2831_v4 }
 0x797   :  { %2836 = vrcp.f32 %v1423_v1 }
 0x798   :  { %2838 = vrcp.f32 %v1430_v28 }
 0x7a0   :  { %v2835_v19 = vpop.eup %2834 }
 0x7a1   :  { %v2837_v31 = vpop.eup %2836  ;;  %v1435_v43 = vmul.f32 %v2835_v19, %v2833_v17 }
 0x7a2   :  { %v1434_v46 = vmul.f32 %v2837_v31, %v3808_v3  ;;  %v2839_v52 = vpop.eup %2838 }
 0x7a4   :  { %v1436_v55 = vadd.f32 %v1435_v43, %v1434_v46 }
 0x7a6   :  { %2840 = vtanh.f32 %v1436_v55 }
 0x7b0   :  { %v2841_v20 = vpop.eup %2840 }
 0x7b1   :  { %v1438_v56 = vmul.f32 %v2841_v20, %v2839_v52 }
 0x7b3   :  { %1442 = vst [vmem:[#allocation13 + $0x30] sm:$0xff] %v1438_v56  ;;  %1510 = vmatprep.mubr.f32.mxu0 %v1438_v56  ;;  %1581 = vmatprep.mubr.f32.mxu1 %v1438_v56 }
 0x7b4   :  { %1511 = vmatmul.mubr.f32.vlgmr.msra.gmra.mrb[14].mxu0 %v1444_v21  ;;  %1582 = vmatmul.mubr.f32.vlgmr.msra.gmra.mrb[14].mxu1 %v1444_v21 }
 0x887   :  { %v1512_v34 = vpop.f32.mrb[14].mxu0  ;;  %v1583_v27 = vpop.f32.mrb[14].mxu1 }
 0x888   :  { %v1513_v35 = vadd.f32 %v4159_v5, %v1512_v34  ;;  %v1514_v2 = vpop.f32.mrb[15].mxu0  ;;  %v1585_v37 = vpop.f32.mrb[15].mxu1  ;;  %v1584_v14 = vadd.f32 %v3804_v60, %v1583_v27 }
 0x889   :  { %v1515_v53 = vadd.f32 %v4160_v22, %v1514_v2  ;;  %v1586_v49 = vadd.f32 %v3801_v10, %v1585_v37 }
 0x88a   :  { %v1691_v38 = vmul.f32 -1.442695, %v1513_v35 }
 0x88b   :  { %v1692_v18 = vmul.f32 -1.442695, %v1515_v53  ;;  %v1693_v11 = vmul.f32 -1.442695, %v1586_v49 }
 0x88c   :  { %2842 = vpow2.f32 %v1691_v38 }
 0x88d   :  { %2844 = vpow2.f32 %v1692_v18 }
 0x88e   :  { %2846 = vpow2.f32 %v1693_v11 }
 0x88f   :  { %2848 = vtanh.f32 %v1584_v14 }
 0x896   :  { %v2843_v0 = vpop.eup %2842 }
 0x897   :  { %v2845_v3 = vpop.eup %2844  ;;  %v1591_v62 = vadd.f32 1.0, %v2843_v0 }
 0x898   :  { %v1597_v26 = vadd.f32 1.0, %v2845_v3  ;;  %v2847_v42 = vpop.eup %2846 }
 0x899   :  { %2850 = vrcp.f32 %v1591_v62  ;;  %v2849_v9 = vpop.eup %2848  ;;  %v1604_v8 = vadd.f32 1.0, %v2847_v42 }
 0x89a   :  { %2852 = vrcp.f32 %v1597_v26 }
 0x89b   :  { %2854 = vrcp.f32 %v1604_v8 }
 0x8a3   :  { %v2851_v7 = vpop.eup %2850 }
 0x8a4   :  { %v2853_v13 = vpop.eup %2852  ;;  %v1609_v16 = vmul.f32 %v2851_v7, %v2849_v9 }
 0x8a5   :  { %v1608_v24 = vmul.f32 %v2853_v13, %v1436_v55  ;;  %v2855_v60 = vpop.eup %2854 }
 0x8a7   :  { %v1610_v25 = vadd.f32 %v1609_v16, %v1608_v24 }
 0x8a9   :  { %1623 = vst [vmem:[#allocation16] sm:$0xff] %v1610_v25  ;;  %2856 = vtanh.f32 %v1610_v25 }
 0x8b3   :  { %v2857_v10 = vpop.eup %2856 }
 0x8b4   :  { %v1612_v29 = vmul.f32 %v2857_v10, %v2855_v60 }
 0x8b6   :  { %1616 = vst [vmem:[#allocation13 + $0x38] sm:$0xff] %v1612_v29  ;;  %1621 = vst [vmem:[#allocation14] sm:$0xff] %v1612_v29 }
 0x8b7   :  { %2983 = shalt.err (!%p2980_p2)
}
 0x8b8   :  { %s2984_s1 = scalar_lea.hbm %s3941_s6, 128 }
 0x8b9   :  { %p2985_p3 = scmp.ne.s32.totalorder %s3941_s6, %s2984_s1  ;;  %p2988_p4 = scmp.lt.u32.totalorder %s2984_s1, %s3941_s6 }
 0x8bb   :  { %p2990_p5 = pnand %p2988_p4, %p2985_p3 }
 0x8bd   :  { %2993 = shalt.err (!%p2990_p5)
}
 0x8be   :  { %1645 = dma.vmem_to_hbm [thread:$0]  %s1643_s15, 128, %s3941_s6, [#allocation15]  }
 0x8bf   :  { %s2994_s29 = scalar_lea.vmem %s3882_s17, 1024  ;;  %p2999_p7 = scmp.lt.s32.totalorder %s3882_s17, %s3882_s17 }
 0x8c0   :  { %p2995_p6 = scmp.ne.s32.totalorder %s3882_s17, %s2994_s29  ;;  %p3000_p8 = scmp.lt.s32.totalorder %s2994_s29, %s2994_s29 }
 0x8c2   :  { %p3001_p9 = por %p3000_p8, %p2999_p7 }
 0x8c4   :  { %p3002_p10 = pnand %p3001_p9, %p2995_p6 }
 0x8c6   :  { %3005 = shalt.err (!%p3002_p10)
}
 0x8c7   :  { %s3006_s9 = scalar_lea.hbm %s3940_s5, 1024 }
 0x8c8   :  { %p3007_p11 = scmp.ne.s32.totalorder %s3940_s5, %s3006_s9  ;;  %p3010_p12 = scmp.lt.u32.totalorder %s3006_s9, %s3940_s5 }
 0x8ca   :  { %p3012_p13 = pnand %p3010_p12, %p3007_p11 }
 0x8cc   :  { %3015 = shalt.err (!%p3012_p13)
}
 0x8cd   :  { %1635 = dma.vmem_to_hbm [thread:$0]  %s3882_s17, 1024, %s3940_s5, [#allocation6], %s3053_s3, %s3053_s3, %s3054_s27  }
 0x8ce   :  { %s3016_s14 = scalar_lea.vmem %s3884_s19, 128  ;;  %p3021_p1 = scmp.lt.s32.totalorder %s3884_s19, %s3884_s19 }
 0x8cf   :  { %p3017_p0 = scmp.ne.s32.totalorder %s3884_s19, %s3016_s14  ;;  %p3022_p2 = scmp.lt.s32.totalorder %s3016_s14, %s3016_s14 }
 0x8d1   :  { %p3023_p3 = por %p3022_p2, %p3021_p1 }
 0x8d3   :  { %p3024_p4 = pnand %p3023_p3, %p3017_p0 }
 0x8d5   :  { %3027 = shalt.err (!%p3024_p4)
}
 0x8d6   :  { %s3028_s16 = scalar_lea.hbm %s3942_s7, 128 }
 0x8d7   :  { %p3029_p5 = scmp.ne.s32.totalorder %s3942_s7, %s3028_s16  ;;  %p3032_p6 = scmp.lt.u32.totalorder %s3028_s16, %s3942_s7 }
 0x8d9   :  { %p3034_p7 = pnand %p3032_p6, %p3029_p5 }
 0x8db   :  { %3037 = shalt.err (!%p3034_p7)
}
 0x8dc   :  { %1655 = dma.vmem_to_hbm [thread:$0]  %s3884_s19, 128, %s3942_s7, [#allocation15]  }
 0x8dd   :  { %3044 = dma.done.wait [#allocation6], 1024  }
 0x8de   :  { %3045 = vsyncadd [#allocation6], 4294966272 }
 0x8df   :  { %3046 = dma.done.wait [#allocation15], 256  }
 0x8e0   :  { %3047 = vsyncadd [#allocation15], 4294967040 }
 0x8e1   :  { %1665 = vsyncpa [#allocation5], 1 }
 0x8e2   :  { %1666 = vsyncpa [#allocation8], 1 }
 0x8e3   :  { %1667 = vsyncpa [#allocation11], 1 }
 0x8e4   :  { %1668 = vsyncpa [#allocation6], 1 }
 0x8e5   :  { %1669 = vsyncpa [#allocation15], 1 }

</bundles_post_ra>
